<compile_context>
chip_gen: v7x
topology: tpu7x:2x2x1
jax: 0.10.0
libtpu: 0.0.40
codegen_flags: <defaults>
</compile_context>

<pallas_src>
import jax
import jax.numpy as jnp
from jax import lax
from jax.experimental import pallas as pl
from jax.experimental.pallas import tpu as pltpu

CP_PAD = 128  # inter_channels (96) padded to the 128-lane vreg width


# ---------------------------------------------------------------------------
# Kernel 1: g 1x1 conv (as a matmul), the unmasked W_z_DD projection, and the
# per-row channel sum needed by the dif/median glue.  Grid: (B, q_tiles).
# ---------------------------------------------------------------------------
def proj_kernel(x_ref, wg_ref, bg_ref, wzdd_ref, g_ref, h_ref, s_ref):
    x = x_ref[0]                                                       # (tq, C)
    g = jnp.dot(x, wg_ref[...], preferred_element_type=jnp.float32) + bg_ref[...]
    g_ref[0] = g.astype(g_ref.dtype)                                   # bf16 writeback
    # (d * g) @ Wzdd^T == d * (g @ Wzdd^T): project now, apply the per-row mask in glue.
    h_ref[0] = jnp.dot(g, wzdd_ref[...], preferred_element_type=jnp.float32)
    # per-row channel sum (pad columns are exactly zero, so this equals the 96-ch sum)
    s_ref[0] = jnp.sum(g, axis=-1, keepdims=True)


# ---------------------------------------------------------------------------
# Kernel 2: flash-style attention (theta/phi recomputed from x in-kernel,
# online softmax over kv tiles) + output projection + relu + residual.
# Grid: (B, q_tiles, kv_tiles) with the reduction (kv) axis last.
# ---------------------------------------------------------------------------
def attn_kernel(xq_ref, xk_ref, gk_ref, hd_ref,
                wt_ref, bt_ref, wp_ref, bp_ref, wz_ref, bc_ref,
                o_ref, th_s, m_s, l_s, acc_s):
    ki = pl.program_id(2)

    @pl.when(ki == 0)
    def _():
        # theta for this query tile, computed once and cached across kv steps
        th_s[...] = jnp.dot(xq_ref[0], wt_ref[...],
                            preferred_element_type=jnp.float32) + bt_ref[...]
        m_s[...] = jnp.full_like(m_s, -jnp.inf)
        l_s[...] = jnp.zeros_like(l_s)
        acc_s[...] = jnp.zeros_like(acc_s)

    # phi for this kv tile (recomputed; tiny vs. the N-sized attention matmuls)
    phi = jnp.dot(xk_ref[0], wp_ref[...],
                  preferred_element_type=jnp.float32) + bp_ref[...]     # (tk, Cpad)

    # scores: bf16 MXU inputs, f32 accumulation; softmax math stays f32
    sc = lax.dot_general(th_s[...].astype(jnp.bfloat16),
                         phi.astype(jnp.bfloat16),
                         (((1,), (1,)), ((), ())),
                         preferred_element_type=jnp.float32)            # (tq, tk)

    m_prev = m_s[...]
    m_new = jnp.maximum(m_prev, jnp.max(sc, axis=-1, keepdims=True))
    alpha = jnp.exp(m_prev - m_new)
    p = jnp.exp(sc - m_new)
    l_s[...] = alpha * l_s[...] + jnp.sum(p, axis=-1, keepdims=True)
    acc_s[...] = alpha * acc_s[...] + jnp.dot(
        p.astype(jnp.bfloat16), gk_ref[0], preferred_element_type=jnp.float32)
    m_s[...] = m_new

    @pl.when(ki == pl.num_programs(2) - 1)
    def _():
        # deferred softmax normalization: one (tq,1) EUP reciprocal instead of an
        # O(tq*N) divide on the score matrix
        y = acc_s[...] * pl.reciprocal(l_s[...], approx=True)           # (tq, Cpad)
        wy = jnp.dot(y, wz_ref[...], preferred_element_type=jnp.float32)  # (tq, C)
        o_ref[0] = jnp.maximum(wy + hd_ref[0] + bc_ref[...], 0.0) + xq_ref[0]


# ---------------------------------------------------------------------------
# Wrapper
# ---------------------------------------------------------------------------
def _pick_tile(n):
    for t in (128, 256, 512):
        if n % t == 0:
            return t
    return n  # whole-N fallback for small / odd spatial sizes


def nl_block_forward(x, params):
    """x: (B, C, H, W) float32 (NCHW, as the PyTorch module expects)."""
    B, C, H, W = x.shape
    N = H * W
    Cp = params["Wg"].shape[0]
    assert Cp == 96, "forward() hardcodes einops.repeat(..., k=96) -> inter_channels must be 96"
    f32 = jnp.float32

    tq = _pick_tile(N)
    tk = tq
    qt, kt = N // tq, N // tk

    # ---- lane-dense parameter prep: zero-pad inter channels 96 -> 128 -------
    def pad_rows(w):   # (Cp, C) -> (CP_PAD, C)
        return jnp.zeros((CP_PAD, w.shape[1]), f32).at[:Cp, :].set(w)

    def pad_cols(w):   # (C, Cp) -> (C, CP_PAD)
        return jnp.zeros((w.shape[0], CP_PAD), f32).at[:, :Cp].set(w)

    def pad_bias(b):   # (Cp,) -> (1, CP_PAD)
        return jnp.zeros((1, CP_PAD), f32).at[0, :Cp].set(b)

    wg_t = pad_rows(params["Wg"]).T            # (C, 128)
    wt_t = pad_rows(params["Wt"]).T            # (C, 128)
    wp_t = pad_rows(params["Wp"]).T            # (C, 128)
    bg = pad_bias(params["bg"])
    bt = pad_bias(params["bt"])
    bp = pad_bias(params["bp"])
    wz_t = pad_cols(params["Wz_eff"]).T        # (128, C)
    wzdd_t = pad_cols(params["Wzdd_eff"]).T    # (128, C)
    b_comb = (params["bz_eff"] + params["bzdd_eff"]).reshape(1, C)   # bias of relu(W_y+W_y_DD)

    x_flat = jnp.transpose(x.reshape(B, C, N), (0, 2, 1)).astype(f32)   # (B, N, C)

    vmem_cap = 32 * 1024 * 1024  # explicit scoped-VMEM budget (safe on v5e/v6e/v7x)

    # ---- kernel 1: g projection, unmasked DD projection, row sums -----------
    g_x, h, s = pl.pallas_call(
        proj_kernel,
        grid=(B, qt),
        in_specs=[pl.BlockSpec((1, tq, C), lambda b, q: (b, q, 0)),
                  pl.BlockSpec((C, CP_PAD), lambda b, q: (0, 0)),
                  pl.BlockSpec((1, CP_PAD), lambda b, q: (0, 0)),
                  pl.BlockSpec((CP_PAD, C), lambda b, q: (0, 0))],
        out_specs=[pl.BlockSpec((1, tq, CP_PAD), lambda b, q: (b, q, 0)),
                   pl.BlockSpec((1, tq, C), lambda b, q: (b, q, 0)),
                   pl.BlockSpec((1, tq, 1), lambda b, q: (b, q, 0))],
        out_shape=(jax.ShapeDtypeStruct((B, N, CP_PAD), jnp.bfloat16),  # g_x (bf16)
                   jax.ShapeDtypeStruct((B, N, C), f32),                # h = g_x @ Wzdd^T
                   jax.ShapeDtypeStruct((B, N, 1), f32)),               # row sums
        compiler_params=pltpu.CompilerParams(
            dimension_semantics=("parallel", "parallel"),
            vmem_limit_bytes=vmem_cap),
    )(x_flat, wg_t, bg, wzdd_t)

    # ---- glue: dif / median split / mask, applied to the projected DD branch
    s2 = s[..., 0]                                                       # (B, N)
    dif = jnp.concatenate([jnp.zeros((B, 1), f32), s2[:, 1:] - s2[:, :-1]], axis=1)
    split_val = jnp.quantile(dif, 0.5, axis=1)        # torch.quantile(., 0.5, dim=1)
    d = (dif >= split_val[:, None]).astype(f32)                          # (B, N)
    hd = h * d[:, :, None]                            # W_y_DD minus bias, (B, N, C)

    # ---- kernel 2: flash attention + output projection + relu + residual ----
    z_flat = pl.pallas_call(
        attn_kernel,
        grid=(B, qt, kt),
        in_specs=[pl.BlockSpec((1, tq, C), lambda b, q, k: (b, q, 0)),        # x (query rows)
                  pl.BlockSpec((1, tk, C), lambda b, q, k: (b, k, 0)),        # x (kv rows)
                  pl.BlockSpec((1, tk, CP_PAD), lambda b, q, k: (b, k, 0)),   # g_x (kv rows)
                  pl.BlockSpec((1, tq, C), lambda b, q, k: (b, q, 0)),        # hd (query rows)
                  pl.BlockSpec((C, CP_PAD), lambda b, q, k: (0, 0)),          # W_theta^T
                  pl.BlockSpec((1, CP_PAD), lambda b, q, k: (0, 0)),
                  pl.BlockSpec((C, CP_PAD), lambda b, q, k: (0, 0)),          # W_phi^T
                  pl.BlockSpec((1, CP_PAD), lambda b, q, k: (0, 0)),
                  pl.BlockSpec((CP_PAD, C), lambda b, q, k: (0, 0)),          # W_z^T
                  pl.BlockSpec((1, C), lambda b, q, k: (0, 0))],              # bz + bzdd
        out_specs=pl.BlockSpec((1, tq, C), lambda b, q, k: (b, q, 0)),
        out_shape=jax.ShapeDtypeStruct((B, N, C), f32),
        scratch_shapes=[pltpu.VMEM((tq, CP_PAD), f32),    # theta for the query tile
                        pltpu.VMEM((tq, 1), f32),         # running max
                        pltpu.VMEM((tq, 1), f32),         # running sum
                        pltpu.VMEM((tq, CP_PAD), f32)],   # output accumulator
        input_output_aliases={3: 0},   # hd's q-tile is dead once read -> reuse its HBM
        compiler_params=pltpu.CompilerParams(
            dimension_semantics=("parallel", "parallel", "arbitrary"),
            vmem_limit_bytes=vmem_cap),
    )(x_flat, x_flat, g_x, hd, wt_t, bt, wp_t, bp, wz_t, b_comb)

    return jnp.transpose(z_flat, (0, 2, 1)).reshape(B, C, H, W)


# ---------------------------------------------------------------------------
# Pure-JAX reference (mirrors the PyTorch forward) for correctness checking.
# ---------------------------------------------------------------------------
def reference_forward(x, params):
    B, C, H, W = x.shape
    N = H * W
    xf = x.reshape(B, C, N)

    def conv1(w, b):
        return jnp.einsum("oc,bcn->bon", w, xf) + b[None, :, None]

    g_x = jnp.transpose(conv1(params["Wg"], params["bg"]), (0, 2, 1))      # (B, N, Cp)
    theta = jnp.transpose(conv1(params["Wt"], params["bt"]), (0, 2, 1))    # (B, N, Cp)
    phi = conv1(params["Wp"], params["bp"])                                # (B, Cp, N)
    f = jnp.einsum("bnc,bcm->bnm", theta, phi)
    f_div_c = jax.nn.softmax(f, axis=-1)

    s = jnp.sum(g_x, axis=2)
    dif = jnp.concatenate([jnp.zeros((B, 1), x.dtype), s[:, 1:] - s[:, :-1]], axis=1)
    split_val = jnp.quantile(dif, 0.5, axis=1)
    d = (dif >= split_val[:, None]).astype(x.dtype)

    y_dd = g_x * d[:, :, None]
    y = jnp.einsum("bnm,bmc->bnc", f_div_c, g_x)

    def wz(w_eff, b_eff, v):
        return jnp.einsum("bnc,oc->bno", v, w_eff) + b_eff[None, None, :]

    wy = wz(params["Wz_eff"], params["bz_eff"], y)
    wydd = wz(params["Wzdd_eff"], params["bzdd_eff"], y_dd)
    xf_nc = jnp.transpose(xf, (0, 2, 1))
    z = jnp.maximum(wy + wydd, 0.0) + xf_nc
    return jnp.transpose(z, (0, 2, 1)).reshape(B, C, H, W)


# ---------------------------------------------------------------------------
# Deterministic parameter construction (eval-mode BN folded into W_z / W_z_DD)
# ---------------------------------------------------------------------------
def make_params(key, in_channels, inter_channels):
    C, Cp = in_channels, inter_channels
    ks = jax.random.split(key, 20)

    def rnd(k, shape, scale=0.1):
        return scale * jax.random.normal(k, shape, dtype=jnp.float32)

    def fold_bn(w, b, gamma, beta, mean, var, eps=1e-5):
        scale = gamma / jnp.sqrt(var + eps)
        return w * scale[:, None], b * scale + (beta - mean * scale)

    Wz, bz = rnd(ks[6], (C, Cp)), rnd(ks[7], (C,))
    Wzdd, bzdd = rnd(ks[8], (C, Cp)), rnd(ks[9], (C,))
    Wz_eff, bz_eff = fold_bn(Wz, bz, 1.0 + rnd(ks[10], (C,)), rnd(ks[11], (C,)),
                             rnd(ks[12], (C,)), jnp.abs(rnd(ks[13], (C,))) + 1.0)
    Wzdd_eff, bzdd_eff = fold_bn(Wzdd, bzdd, 1.0 + rnd(ks[14], (C,)), rnd(ks[15], (C,)),
                                 rnd(ks[16], (C,)), jnp.abs(rnd(ks[17], (C,))) + 1.0)
    return {
        "Wg": rnd(ks[0], (Cp, C)), "bg": rnd(ks[1], (Cp,)),
        "Wt": rnd(ks[2], (Cp, C)), "bt": rnd(ks[3], (Cp,)),
        "Wp": rnd(ks[4], (Cp, C)), "bp": rnd(ks[5], (Cp,)),
        "Wz_eff": Wz_eff, "bz_eff": bz_eff,
        "Wzdd_eff": Wzdd_eff, "bzdd_eff": bzdd_eff,
    }


if __name__ == "__main__":
    # dimension=2, mode='embedded'; inter_channels must be 96 (hardcoded k=96 in forward).
    # H=W=16 -> N=256, so the attention runs 2x2 (query x kv) flash tiles of 128.
    B, C, H, W = 2, 32, 16, 16
    Cp = 96

    key = jax.random.PRNGKey(0)
    k_x, k_p = jax.random.split(key)
    x = jax.random.normal(k_x, (B, C, H, W), dtype=jnp.float32)
    params = make_params(k_p, C, Cp)

    fwd = jax.jit(nl_block_forward)
    z = jax.block_until_ready(fwd(x, params))

    z_ref = reference_forward(x, params)
    assert z.shape == (B, C, H, W)
    # bf16 MXU inputs (f32 accumulation) + approx reciprocal -> loosened tolerance vs f32 ref
    assert jnp.allclose(z, z_ref, rtol=3e-2, atol=3e-2), "mismatch vs reference"

    print("KERNEL_OK")
</pallas_src>

<mosaic_0001>
module attributes {stable_mosaic.version = 11 : i64} {
  func.func @proj_kernel(%arg0: i32, %arg1: i32, %arg2: memref<1x128x32xf32, #tpu.memory_space<vmem>>, %arg3: memref<32x128xf32, #tpu.memory_space<vmem>>, %arg4: memref<1x128xf32, #tpu.memory_space<vmem>>, %arg5: memref<128x32xf32, #tpu.memory_space<vmem>>, %arg6: memref<1x128x128xbf16, #tpu.memory_space<vmem>>, %arg7: memref<1x128x32xf32, #tpu.memory_space<vmem>>, %arg8: memref<1x128x1xf32, #tpu.memory_space<vmem>>) attributes {dimension_semantics = [#tpu.dimension_semantics<parallel>, #tpu.dimension_semantics<parallel>], iteration_bounds = array<i64: 2, 2>, scalar_prefetch = 0 : i64, scratch_operands = 0 : i64, tpu.core_type = #tpu.core_type<tc>, window_params = [{transform_indices = @transform_0, window_bounds = array<i64: 1, 128, 32>}, {pipeline_mode = #tpu.pipeline_mode<synchronous>, transform_indices = @transform_1, window_bounds = array<i64: 32, 128>}, {pipeline_mode = #tpu.pipeline_mode<synchronous>, transform_indices = @transform_2, window_bounds = array<i64: 1, 128>}, {pipeline_mode = #tpu.pipeline_mode<synchronous>, transform_indices = @transform_3, window_bounds = array<i64: 128, 32>}, {transform_indices = @transform_4, window_bounds = array<i64: 1, 128, 128>}, {transform_indices = @transform_5, window_bounds = array<i64: 1, 128, 32>}, {transform_indices = @transform_6, window_bounds = array<i64: 1, 128, 1>}]} {
    %c0 = arith.constant 0 : index
    %c0_0 = arith.constant 0 : index
    %c0_1 = arith.constant 0 : index
    %0 = vector.load %arg2[%c0, %c0_0, %c0_1] : memref<1x128x32xf32, #tpu.memory_space<vmem>>, vector<1x128x32xf32>
    %1 = vector.shape_cast %0 : vector<1x128x32xf32> to vector<128x32xf32>
    %c0_2 = arith.constant 0 : index
    %c0_3 = arith.constant 0 : index
    %2 = vector.load %arg3[%c0_2, %c0_3] : memref<32x128xf32, #tpu.memory_space<vmem>>, vector<32x128xf32>
    %cst = arith.constant dense<0.000000e+00> : vector<128x128xf32>
    %3 = tpu.matmul %1, %2, %cst {dimension_numbers = #tpu.dot_dimension_numbers<[1], [0], [0], [1], [0, 0, 1, 1], [], []>} : vector<128x32xf32>, vector<32x128xf32>, vector<128x128xf32> -> vector<128x128xf32>
    %c0_4 = arith.constant 0 : index
    %c0_5 = arith.constant 0 : index
    %4 = vector.load %arg4[%c0_4, %c0_5] : memref<1x128xf32, #tpu.memory_space<vmem>>, vector<1x128xf32>
    %5 = vector.broadcast %4 : vector<1x128xf32> to vector<128x128xf32>
    %6 = arith.addf %3, %5 : vector<128x128xf32>
    %7 = arith.truncf %6 : vector<128x128xf32> to vector<128x128xbf16>
    %c0_6 = arith.constant 0 : index
    %c0_7 = arith.constant 0 : index
    %c0_8 = arith.constant 0 : index
    %8 = vector.load %arg6[%c0_6, %c0_7, %c0_8] : memref<1x128x128xbf16, #tpu.memory_space<vmem>>, vector<1x128x128xbf16>
    %9 = vector.shape_cast %8 : vector<1x128x128xbf16> to vector<128x128xbf16>
    %10 = vector.shape_cast %7 : vector<128x128xbf16> to vector<1x128x128xbf16>
    tpu.vector_store %arg6[%c0_6, %c0_7, %c0_8], %10 {strides = array<i32>} : memref<1x128x128xbf16, #tpu.memory_space<vmem>>, vector<1x128x128xbf16>,
    %c0_9 = arith.constant 0 : index
    %c0_10 = arith.constant 0 : index
    %11 = vector.load %arg5[%c0_9, %c0_10] : memref<128x32xf32, #tpu.memory_space<vmem>>, vector<128x32xf32>
    %cst_11 = arith.constant dense<0.000000e+00> : vector<128x32xf32>
    %12 = tpu.matmul %6, %11, %cst_11 {dimension_numbers = #tpu.dot_dimension_numbers<[1], [0], [0], [1], [0, 0, 1, 1], [], []>} : vector<128x128xf32>, vector<128x32xf32>, vector<128x32xf32> -> vector<128x32xf32>
    %c0_12 = arith.constant 0 : index
    %c0_13 = arith.constant 0 : index
    %c0_14 = arith.constant 0 : index
    %13 = vector.load %arg7[%c0_12, %c0_13, %c0_14] : memref<1x128x32xf32, #tpu.memory_space<vmem>>, vector<1x128x32xf32>
    %14 = vector.shape_cast %13 : vector<1x128x32xf32> to vector<128x32xf32>
    %15 = vector.shape_cast %12 : vector<128x32xf32> to vector<1x128x32xf32>
    tpu.vector_store %arg7[%c0_12, %c0_13, %c0_14], %15 {strides = array<i32>} : memref<1x128x32xf32, #tpu.memory_space<vmem>>, vector<1x128x32xf32>,
    %cst_15 = arith.constant dense<0.000000e+00> : vector<128xf32>
    %16 = vector.multi_reduction <add>, %6, %cst_15 [1] : vector<128x128xf32> to vector<128xf32>
    %17 = vector.shape_cast %16 : vector<128xf32> to vector<128x1xf32>
    %c0_16 = arith.constant 0 : index
    %c0_17 = arith.constant 0 : index
    %c0_18 = arith.constant 0 : index
    %18 = vector.load %arg8[%c0_16, %c0_17, %c0_18] : memref<1x128x1xf32, #tpu.memory_space<vmem>>, vector<1x128x1xf32>
    %19 = vector.shape_cast %18 : vector<1x128x1xf32> to vector<128x1xf32>
    %20 = vector.shape_cast %17 : vector<128x1xf32> to vector<1x128x1xf32>
    tpu.vector_store %arg8[%c0_16, %c0_17, %c0_18], %20 {strides = array<i32>} : memref<1x128x1xf32, #tpu.memory_space<vmem>>, vector<1x128x1xf32>,
    return
  }
  func.func @transform_0(%arg0: i32, %arg1: i32) -> (i32, i32, i32) {
    %c0_i32 = arith.constant 0 : i32
    %c0_i32_0 = arith.constant 0 : i32
    return %arg0, %arg1, %c0_i32 : i32, i32, i32
  }
  func.func @transform_1(%arg0: i32, %arg1: i32) -> (i32, i32) {
    %c0_i32 = arith.constant 0 : i32
    %c0_i32_0 = arith.constant 0 : i32
    %c0_i32_1 = arith.constant 0 : i32
    return %c0_i32, %c0_i32_0 : i32, i32
  }
  func.func @transform_2(%arg0: i32, %arg1: i32) -> (i32, i32) {
    %c0_i32 = arith.constant 0 : i32
    %c0_i32_0 = arith.constant 0 : i32
    %c0_i32_1 = arith.constant 0 : i32
    return %c0_i32, %c0_i32_0 : i32, i32
  }
  func.func @transform_3(%arg0: i32, %arg1: i32) -> (i32, i32) {
    %c0_i32 = arith.constant 0 : i32
    %c0_i32_0 = arith.constant 0 : i32
    %c0_i32_1 = arith.constant 0 : i32
    return %c0_i32, %c0_i32_0 : i32, i32
  }
  func.func @transform_4(%arg0: i32, %arg1: i32) -> (i32, i32, i32) {
    %c0_i32 = arith.constant 0 : i32
    %c0_i32_0 = arith.constant 0 : i32
    return %arg0, %arg1, %c0_i32 : i32, i32, i32
  }
  func.func @transform_5(%arg0: i32, %arg1: i32) -> (i32, i32, i32) {
    %c0_i32 = arith.constant 0 : i32
    %c0_i32_0 = arith.constant 0 : i32
    return %arg0, %arg1, %c0_i32 : i32, i32, i32
  }
  func.func @transform_6(%arg0: i32, %arg1: i32) -> (i32, i32, i32) {
    %c0_i32 = arith.constant 0 : i32
    %c0_i32_0 = arith.constant 0 : i32
    return %arg0, %arg1, %c0_i32 : i32, i32, i32
  }
}

module attributes {stable_mosaic.version = 11 : i64} {
  func.func @attn_kernel(%arg0: i32, %arg1: i32, %arg2: i32, %arg3: memref<1x128x32xf32, #tpu.memory_space<vmem>>, %arg4: memref<1x128x32xf32, #tpu.memory_space<vmem>>, %arg5: memref<1x128x128xbf16, #tpu.memory_space<vmem>>, %arg6: memref<1x128x32xf32, #tpu.memory_space<vmem>>, %arg7: memref<32x128xf32, #tpu.memory_space<vmem>>, %arg8: memref<1x128xf32, #tpu.memory_space<vmem>>, %arg9: memref<32x128xf32, #tpu.memory_space<vmem>>, %arg10: memref<1x128xf32, #tpu.memory_space<vmem>>, %arg11: memref<128x32xf32, #tpu.memory_space<vmem>>, %arg12: memref<1x32xf32, #tpu.memory_space<vmem>>, %arg13: memref<1x128x32xf32, #tpu.memory_space<vmem>>, %arg14: memref<128x128xf32, #tpu.memory_space<vmem>>, %arg15: memref<128x1xf32, #tpu.memory_space<vmem>>, %arg16: memref<128x1xf32, #tpu.memory_space<vmem>>, %arg17: memref<128x128xf32, #tpu.memory_space<vmem>>) attributes {dimension_semantics = [#tpu.dimension_semantics<parallel>, #tpu.dimension_semantics<parallel>, #tpu.dimension_semantics<arbitrary>], iteration_bounds = array<i64: 2, 2, 2>, scalar_prefetch = 0 : i64, scratch_operands = 4 : i64, tpu.core_type = #tpu.core_type<tc>, window_params = [{transform_indices = @transform_0, window_bounds = array<i64: 1, 128, 32>}, {transform_indices = @transform_1, window_bounds = array<i64: 1, 128, 32>}, {transform_indices = @transform_2, window_bounds = array<i64: 1, 128, 128>}, {transform_indices = @transform_3, window_bounds = array<i64: 1, 128, 32>}, {pipeline_mode = #tpu.pipeline_mode<synchronous>, transform_indices = @transform_4, window_bounds = array<i64: 32, 128>}, {pipeline_mode = #tpu.pipeline_mode<synchronous>, transform_indices = @transform_5, window_bounds = array<i64: 1, 128>}, {pipeline_mode = #tpu.pipeline_mode<synchronous>, transform_indices = @transform_6, window_bounds = array<i64: 32, 128>}, {pipeline_mode = #tpu.pipeline_mode<synchronous>, transform_indices = @transform_7, window_bounds = array<i64: 1, 128>}, {pipeline_mode = #tpu.pipeline_mode<synchronous>, transform_indices = @transform_8, window_bounds = array<i64: 128, 32>}, {pipeline_mode = #tpu.pipeline_mode<synchronous>, transform_indices = @transform_9, window_bounds = array<i64: 1, 32>}, {transform_indices = @transform_10, window_bounds = array<i64: 1, 128, 32>}]} {
    %c0_i32 = arith.constant 0 : i32
    %0 = arith.cmpi eq, %arg2, %c0_i32 : i32
    %1 = arith.extui %0 : i1 to i32
    %c0_i32_0 = arith.constant 0 : i32
    %2 = arith.cmpi ne, %1, %c0_i32_0 : i32
    scf.if %2 {
      %c0_29 = arith.constant 0 : index
      %c0_30 = arith.constant 0 : index
      %c0_31 = arith.constant 0 : index
      %42 = vector.load %arg3[%c0_29, %c0_30, %c0_31] : memref<1x128x32xf32, #tpu.memory_space<vmem>>, vector<1x128x32xf32>
      %43 = vector.shape_cast %42 : vector<1x128x32xf32> to vector<128x32xf32>
      %c0_32 = arith.constant 0 : index
      %c0_33 = arith.constant 0 : index
      %44 = vector.load %arg7[%c0_32, %c0_33] : memref<32x128xf32, #tpu.memory_space<vmem>>, vector<32x128xf32>
      %cst_34 = arith.constant dense<0.000000e+00> : vector<128x128xf32>
      %45 = tpu.matmul %43, %44, %cst_34 {dimension_numbers = #tpu.dot_dimension_numbers<[1], [0], [0], [1], [0, 0, 1, 1], [], []>} : vector<128x32xf32>, vector<32x128xf32>, vector<128x128xf32> -> vector<128x128xf32>
      %c0_35 = arith.constant 0 : index
      %c0_36 = arith.constant 0 : index
      %46 = vector.load %arg8[%c0_35, %c0_36] : memref<1x128xf32, #tpu.memory_space<vmem>>, vector<1x128xf32>
      %47 = vector.broadcast %46 : vector<1x128xf32> to vector<128x128xf32>
      %48 = arith.addf %45, %47 : vector<128x128xf32>
      %c0_37 = arith.constant 0 : index
      %c0_38 = arith.constant 0 : index
      %49 = vector.load %arg14[%c0_37, %c0_38] : memref<128x128xf32, #tpu.memory_space<vmem>>, vector<128x128xf32>
      tpu.vector_store %arg14[%c0_37, %c0_38], %48 {strides = array<i32>} : memref<128x128xf32, #tpu.memory_space<vmem>>, vector<128x128xf32>,
      %cst_39 = arith.constant 0xFF800000 : f32
      %50 = vector.broadcast %cst_39 : f32 to vector<128x1xf32>
      %c0_40 = arith.constant 0 : index
      %c0_41 = arith.constant 0 : index
      %51 = vector.load %arg15[%c0_40, %c0_41] : memref<128x1xf32, #tpu.memory_space<vmem>>, vector<128x1xf32>
      tpu.vector_store %arg15[%c0_40, %c0_41], %50 {strides = array<i32>} : memref<128x1xf32, #tpu.memory_space<vmem>>, vector<128x1xf32>,
      %cst_42 = arith.constant 0.000000e+00 : f32
      %52 = vector.broadcast %cst_42 : f32 to vector<128x1xf32>
      %c0_43 = arith.constant 0 : index
      %c0_44 = arith.constant 0 : index
      %53 = vector.load %arg16[%c0_43, %c0_44] : memref<128x1xf32, #tpu.memory_space<vmem>>, vector<128x1xf32>
      tpu.vector_store %arg16[%c0_43, %c0_44], %52 {strides = array<i32>} : memref<128x1xf32, #tpu.memory_space<vmem>>, vector<128x1xf32>,
      %cst_45 = arith.constant 0.000000e+00 : f32
      %54 = vector.broadcast %cst_45 : f32 to vector<128x128xf32>
      %c0_46 = arith.constant 0 : index
      %c0_47 = arith.constant 0 : index
      %55 = vector.load %arg17[%c0_46, %c0_47] : memref<128x128xf32, #tpu.memory_space<vmem>>, vector<128x128xf32>
      tpu.vector_store %arg17[%c0_46, %c0_47], %54 {strides = array<i32>} : memref<128x128xf32, #tpu.memory_space<vmem>>, vector<128x128xf32>,
    } else {
    }
    %c0 = arith.constant 0 : index
    %c0_1 = arith.constant 0 : index
    %c0_2 = arith.constant 0 : index
    %3 = vector.load %arg4[%c0, %c0_1, %c0_2] : memref<1x128x32xf32, #tpu.memory_space<vmem>>, vector<1x128x32xf32>
    %4 = vector.shape_cast %3 : vector<1x128x32xf32> to vector<128x32xf32>
    %c0_3 = arith.constant 0 : index
    %c0_4 = arith.constant 0 : index
    %5 = vector.load %arg9[%c0_3, %c0_4] : memref<32x128xf32, #tpu.memory_space<vmem>>, vector<32x128xf32>
    %cst = arith.constant dense<0.000000e+00> : vector<128x128xf32>
    %6 = tpu.matmul %4, %5, %cst {dimension_numbers = #tpu.dot_dimension_numbers<[1], [0], [0], [1], [0, 0, 1, 1], [], []>} : vector<128x32xf32>, vector<32x128xf32>, vector<128x128xf32> -> vector<128x128xf32>
    %c0_5 = arith.constant 0 : index
    %c0_6 = arith.constant 0 : index
    %7 = vector.load %arg10[%c0_5, %c0_6] : memref<1x128xf32, #tpu.memory_space<vmem>>, vector<1x128xf32>
    %8 = vector.broadcast %7 : vector<1x128xf32> to vector<128x128xf32>
    %9 = arith.addf %6, %8 : vector<128x128xf32>
    %c0_7 = arith.constant 0 : index
    %c0_8 = arith.constant 0 : index
    %10 = vector.load %arg14[%c0_7, %c0_8] : memref<128x128xf32, #tpu.memory_space<vmem>>, vector<128x128xf32>
    %11 = arith.truncf %10 : vector<128x128xf32> to vector<128x128xbf16>
    %12 = arith.truncf %9 : vector<128x128xf32> to vector<128x128xbf16>
    %cst_9 = arith.constant dense<0.000000e+00> : vector<128x128xf32>
    %13 = tpu.matmul %11, %12, %cst_9 {dimension_numbers = #tpu.dot_dimension_numbers<[1], [1], [0], [0], [0, 0, 1, 0], [], []>} : vector<128x128xbf16>, vector<128x128xbf16>, vector<128x128xf32> -> vector<128x128xf32>
    %c0_10 = arith.constant 0 : index
    %c0_11 = arith.constant 0 : index
    %14 = vector.load %arg15[%c0_10, %c0_11] : memref<128x1xf32, #tpu.memory_space<vmem>>, vector<128x1xf32>
    %cst_12 = arith.constant dense<0xFF800000> : vector<128xf32>
    %15 = vector.multi_reduction <maximumf>, %13, %cst_12 [1] : vector<128x128xf32> to vector<128xf32>
    %16 = vector.shape_cast %15 : vector<128xf32> to vector<128x1xf32>
    %17 = arith.maximumf %14, %16 : vector<128x1xf32>
    %18 = arith.subf %14, %17 : vector<128x1xf32>
    %19 = math.exp %18 : vector<128x1xf32>
    %20 = vector.broadcast %17 : vector<128x1xf32> to vector<128x128xf32>
    %21 = arith.subf %13, %20 : vector<128x128xf32>
    %22 = math.exp %21 : vector<128x128xf32>
    %c0_13 = arith.constant 0 : index
    %c0_14 = arith.constant 0 : index
    %23 = vector.load %arg16[%c0_13, %c0_14] : memref<128x1xf32, #tpu.memory_space<vmem>>, vector<128x1xf32>
    %24 = arith.mulf %19, %23 : vector<128x1xf32>
    %cst_15 = arith.constant dense<0.000000e+00> : vector<128xf32>
    %25 = vector.multi_reduction <add>, %22, %cst_15 [1] : vector<128x128xf32> to vector<128xf32>
    %26 = vector.shape_cast %25 : vector<128xf32> to vector<128x1xf32>
    %27 = arith.addf %24, %26 : vector<128x1xf32>
    %c0_16 = arith.constant 0 : index
    %c0_17 = arith.constant 0 : index
    %28 = vector.load %arg16[%c0_16, %c0_17] : memref<128x1xf32, #tpu.memory_space<vmem>>, vector<128x1xf32>
    tpu.vector_store %arg16[%c0_16, %c0_17], %27 {strides = array<i32>} : memref<128x1xf32, #tpu.memory_space<vmem>>, vector<128x1xf32>,
    %c0_18 = arith.constant 0 : index
    %c0_19 = arith.constant 0 : index
    %29 = vector.load %arg17[%c0_18, %c0_19] : memref<128x128xf32, #tpu.memory_space<vmem>>, vector<128x128xf32>
    %30 = vector.broadcast %19 : vector<128x1xf32> to vector<128x128xf32>
    %31 = arith.mulf %30, %29 : vector<128x128xf32>
    %32 = arith.truncf %22 : vector<128x128xf32> to vector<128x128xbf16>
    %c0_20 = arith.constant 0 : index
    %c0_21 = arith.constant 0 : index
    %c0_22 = arith.constant 0 : index
    %33 = vector.load %arg5[%c0_20, %c0_21, %c0_22] : memref<1x128x128xbf16, #tpu.memory_space<vmem>>, vector<1x128x128xbf16>
    %34 = vector.shape_cast %33 : vector<1x128x128xbf16> to vector<128x128xbf16>
    %cst_23 = arith.constant dense<0.000000e+00> : vector<128x128xf32>
    %35 = tpu.matmul %32, %34, %cst_23 {dimension_numbers = #tpu.dot_dimension_numbers<[1], [0], [0], [1], [0, 0, 1, 1], [], []>} : vector<128x128xbf16>, vector<128x128xbf16>, vector<128x128xf32> -> vector<128x128xf32>
    %36 = arith.addf %31, %35 : vector<128x128xf32>
    %c0_24 = arith.constant 0 : index
    %c0_25 = arith.constant 0 : index
    %37 = vector.load %arg17[%c0_24, %c0_25] : memref<128x128xf32, #tpu.memory_space<vmem>>, vector<128x128xf32>
    tpu.vector_store %arg17[%c0_24, %c0_25], %36 {strides = array<i32>} : memref<128x128xf32, #tpu.memory_space<vmem>>, vector<128x128xf32>,
    %c0_26 = arith.constant 0 : index
    %c0_27 = arith.constant 0 : index
    %38 = vector.load %arg15[%c0_26, %c0_27] : memref<128x1xf32, #tpu.memory_space<vmem>>, vector<128x1xf32>
    tpu.vector_store %arg15[%c0_26, %c0_27], %17 {strides = array<i32>} : memref<128x1xf32, #tpu.memory_space<vmem>>, vector<128x1xf32>,
    %c1_i32 = arith.constant 1 : i32
    %39 = arith.cmpi eq, %arg2, %c1_i32 : i32
    %40 = arith.extui %39 : i1 to i32
    %c0_i32_28 = arith.constant 0 : i32
    %41 = arith.cmpi ne, %40, %c0_i32_28 : i32
    scf.if %41 {
      %c0_29 = arith.constant 0 : index
      %c0_30 = arith.constant 0 : index
      %42 = vector.load %arg17[%c0_29, %c0_30] : memref<128x128xf32, #tpu.memory_space<vmem>>, vector<128x128xf32>
      %c0_31 = arith.constant 0 : index
      %c0_32 = arith.constant 0 : index
      %43 = vector.load %arg16[%c0_31, %c0_32] : memref<128x1xf32, #tpu.memory_space<vmem>>, vector<128x1xf32>
      %44 = tpu.reciprocal %43 {approx = true} : vector<128x1xf32> -> vector<128x1xf32>
      %45 = vector.broadcast %44 : vector<128x1xf32> to vector<128x128xf32>
      %46 = arith.mulf %42, %45 : vector<128x128xf32>
      %c0_33 = arith.constant 0 : index
      %c0_34 = arith.constant 0 : index
      %47 = vector.load %arg11[%c0_33, %c0_34] : memref<128x32xf32, #tpu.memory_space<vmem>>, vector<128x32xf32>
      %cst_35 = arith.constant dense<0.000000e+00> : vector<128x32xf32>
      %48 = tpu.matmul %46, %47, %cst_35 {dimension_numbers = #tpu.dot_dimension_numbers<[1], [0], [0], [1], [0, 0, 1, 1], [], []>} : vector<128x128xf32>, vector<128x32xf32>, vector<128x32xf32> -> vector<128x32xf32>
      %c0_36 = arith.constant 0 : index
      %c0_37 = arith.constant 0 : index
      %c0_38 = arith.constant 0 : index
      %49 = vector.load %arg6[%c0_36, %c0_37, %c0_38] : memref<1x128x32xf32, #tpu.memory_space<vmem>>, vector<1x128x32xf32>
      %50 = vector.shape_cast %49 : vector<1x128x32xf32> to vector<128x32xf32>
      %51 = arith.addf %48, %50 : vector<128x32xf32>
      %c0_39 = arith.constant 0 : index
      %c0_40 = arith.constant 0 : index
      %52 = vector.load %arg12[%c0_39, %c0_40] : memref<1x32xf32, #tpu.memory_space<vmem>>, vector<1x32xf32>
      %53 = vector.broadcast %52 : vector<1x32xf32> to vector<128x32xf32>
      %54 = arith.addf %51, %53 : vector<128x32xf32>
      %cst_41 = arith.constant 0.000000e+00 : f32
      %55 = vector.broadcast %cst_41 : f32 to vector<128x32xf32>
      %56 = arith.maximumf %54, %55 : vector<128x32xf32>
      %c0_42 = arith.constant 0 : index
      %c0_43 = arith.constant 0 : index
      %c0_44 = arith.constant 0 : index
      %57 = vector.load %arg3[%c0_42, %c0_43, %c0_44] : memref<1x128x32xf32, #tpu.memory_space<vmem>>, vector<1x128x32xf32>
      %58 = vector.shape_cast %57 : vector<1x128x32xf32> to vector<128x32xf32>
      %59 = arith.addf %56, %58 : vector<128x32xf32>
      %c0_45 = arith.constant 0 : index
      %c0_46 = arith.constant 0 : index
      %c0_47 = arith.constant 0 : index
      %60 = vector.load %arg13[%c0_45, %c0_46, %c0_47] : memref<1x128x32xf32, #tpu.memory_space<vmem>>, vector<1x128x32xf32>
      %61 = vector.shape_cast %60 : vector<1x128x32xf32> to vector<128x32xf32>
      %62 = vector.shape_cast %59 : vector<128x32xf32> to vector<1x128x32xf32>
      tpu.vector_store %arg13[%c0_45, %c0_46, %c0_47], %62 {strides = array<i32>} : memref<1x128x32xf32, #tpu.memory_space<vmem>>, vector<1x128x32xf32>,
    } else {
    }
    return
  }
  func.func @transform_0(%arg0: i32, %arg1: i32, %arg2: i32) -> (i32, i32, i32) {
    %c0_i32 = arith.constant 0 : i32
    %c0_i32_0 = arith.constant 0 : i32
    return %arg0, %arg1, %c0_i32 : i32, i32, i32
  }
  func.func @transform_1(%arg0: i32, %arg1: i32, %arg2: i32) -> (i32, i32, i32) {
    %c0_i32 = arith.constant 0 : i32
    %c0_i32_0 = arith.constant 0 : i32
    return %arg0, %arg2, %c0_i32 : i32, i32, i32
  }
  func.func @transform_2(%arg0: i32, %arg1: i32, %arg2: i32) -> (i32, i32, i32) {
    %c0_i32 = arith.constant 0 : i32
    %c0_i32_0 = arith.constant 0 : i32
    return %arg0, %arg2, %c0_i32 : i32, i32, i32
  }
  func.func @transform_3(%arg0: i32, %arg1: i32, %arg2: i32) -> (i32, i32, i32) {
    %c0_i32 = arith.constant 0 : i32
    %c0_i32_0 = arith.constant 0 : i32
    return %arg0, %arg1, %c0_i32 : i32, i32, i32
  }
  func.func @transform_4(%arg0: i32, %arg1: i32, %arg2: i32) -> (i32, i32) {
    %c0_i32 = arith.constant 0 : i32
    %c0_i32_0 = arith.constant 0 : i32
    %c0_i32_1 = arith.constant 0 : i32
    return %c0_i32, %c0_i32_0 : i32, i32
  }
  func.func @transform_5(%arg0: i32, %arg1: i32, %arg2: i32) -> (i32, i32) {
    %c0_i32 = arith.constant 0 : i32
    %c0_i32_0 = arith.constant 0 : i32
    %c0_i32_1 = arith.constant 0 : i32
    return %c0_i32, %c0_i32_0 : i32, i32
  }
  func.func @transform_6(%arg0: i32, %arg1: i32, %arg2: i32) -> (i32, i32) {
    %c0_i32 = arith.constant 0 : i32
    %c0_i32_0 = arith.constant 0 : i32
    %c0_i32_1 = arith.constant 0 : i32
    return %c0_i32, %c0_i32_0 : i32, i32
  }
  func.func @transform_7(%arg0: i32, %arg1: i32, %arg2: i32) -> (i32, i32) {
    %c0_i32 = arith.constant 0 : i32
    %c0_i32_0 = arith.constant 0 : i32
    %c0_i32_1 = arith.constant 0 : i32
    return %c0_i32, %c0_i32_0 : i32, i32
  }
  func.func @transform_8(%arg0: i32, %arg1: i32, %arg2: i32) -> (i32, i32) {
    %c0_i32 = arith.constant 0 : i32
    %c0_i32_0 = arith.constant 0 : i32
    %c0_i32_1 = arith.constant 0 : i32
    return %c0_i32, %c0_i32_0 : i32, i32
  }
  func.func @transform_9(%arg0: i32, %arg1: i32, %arg2: i32) -> (i32, i32) {
    %c0_i32 = arith.constant 0 : i32
    %c0_i32_0 = arith.constant 0 : i32
    %c0_i32_1 = arith.constant 0 : i32
    return %c0_i32, %c0_i32_0 : i32, i32
  }
  func.func @transform_10(%arg0: i32, %arg1: i32, %arg2: i32) -> (i32, i32, i32) {
    %c0_i32 = arith.constant 0 : i32
    %c0_i32_0 = arith.constant 0 : i32
    return %arg0, %arg1, %c0_i32 : i32, i32, i32
  }
}

</mosaic_0001>

<bundles_post_ra>
// kernel: nl_block_forward.2
= control target key start
LH: loop header
LB: loop body
LE: loop exit
PB: predicated region body
PF: predicated region fallthrough
CT: control target
= control target key end

     0   :  { %s1481_s21 = smov 0   ;;  %s1483_s22 = smov 0   ;;  %s1743_s0 = inlined_call_operand.vmem [shape: f32[2,256,32], index: 0, kind: input, shape index: {}]   ;;  %s1744_s1 = inlined_call_operand.vmem [shape: f32[32,128], index: 1, kind: input, shape index: {}]   ;;  %s1745_s2 = inlined_call_operand.vmem [shape: f32[1,128], index: 2, kind: input, shape index: {}]   ;;  %s1746_s3 = inlined_call_operand.vmem [shape: f32[128,32], index: 3, kind: input, shape index: {}]   ;;  %s1747_s4 = inlined_call_operand.vmem [shape: bf16[2,256,128], index: 4, kind: output, shape index: {0}]   ;;  %s1748_s5 = inlined_call_operand.vmem [shape: f32[2,256,32], index: 5, kind: output, shape index: {1}]   ;;  %s1749_s6 = inlined_call_operand.vmem [shape: f32[2,256,1], index: 6, kind: output, shape index: {2}]  }
   0x1   :  { %s1485_s23 = smov 0   ;;  %s1487_s24 = smov 0  }
   0x2   :  { %s1489_s25 = smov 0  }
   0x3 LB: > { %s26_s26 = sadd.s32 1, %s1436_s23  ;;  %s29_s27 = sadd.s32 1, %s1440_s24  ;;  %s1444_s25 = sphi %s1489_s25, %s17_s25   ;;  %s1440_s24 = sphi %s1487_s24, %s1753_s24   ;;  %s1436_s23 = sphi %s1485_s23, %s1752_s23   ;;  %s1432_s22 = sphi %s1483_s22, %s1751_s22   ;;  %s1428_s21 = sphi %s1481_s21, %s1750_s21  }
   0x4   : > { %p27_p0 = scmp.ge.s32.totalorder %s26_s26, 2  ;;  %p1059_p1 = scmp.ge.s32.totalorder %s1444_s25, 1 }
   0x5   : > { %p242_p2 = scmp.lt.s32.totalorder %s1444_s25, 5 }
   0x6   : > { %s1755_s26 = smov (%p27_p0, %s26_s26), 0  ;;  %s1757_s27 = smov (!%p27_p0, %s29_s27), %s1440_s24 }
   0x7   : > { %p243_p3 = pnand %p1059_p1, %p242_p2  ;;  %p31_p4 = scmp.ge.s32.totalorder %s1757_s27, 2 }
   0x8   : > { %v354_v0 = vld [vmem:[%s1744_s1] sm:$0xff] (!%p243_p3)  ;;  %v355_v1 = vld [vmem:[%s1744_s1 + $0x8] sm:$0xff] (!%p243_p3)  ;;  %v356_v2 = vld [vmem:[%s1744_s1 + $0x10] sm:$0xff] (!%p243_p3)  ;;  %s1060_s10 = sshll.u32 (!%p243_p3), %s1428_s21, 4  ;;  %p299_p5 = scmp.lt.s32.totalorder (!%p243_p3), %s1432_s22, 1  ;;  %vm365_vm0 = vcmask (!%p243_p3), 261120  }
   0x9   : > { %s1759_s27 = smov (%p31_p4, %s1757_s27), 0  ;;  %246 = sbr.rel (%p243_p3) target bundleno = 481 (0x1e1), region = 36 }
   0xa   : > { %v1310_v3 = vpack.c.bf16 (!%p243_p3), %v355_v1, %v354_v0  ;;  %v357_v4 = vld [vmem:[%s1744_s1 + $0x18] sm:$0xff] (!%p243_p3)  ;;  %p301_p6 = scmp.lt.s32.totalorder (!%p243_p3), %s1060_s10, 31  ;;  %v639_v5 = vld [vmem:[%s1746_s3] sm:$0xff] (!%p243_p3)  ;;  %v640_v6 = vld [vmem:[%s1746_s3 + $0x8] sm:$0xff] (!%p243_p3)  ;;  %vm848_vm1 = vcmask (!%p243_p3), 7168  }
   0xb   : > { %v1314_v7 = vpack.c.bf16 (!%p243_p3), %v357_v4, %v356_v2  ;;  %v1318_v8 = vpack.c.bf16 (!%p243_p3), %v640_v6, %v639_v5  ;;  %v641_v9 = vld [vmem:[%s1746_s3 + $0x10] sm:$0xff] (!%p243_p3)  ;;  %v642_v10 = vld [vmem:[%s1746_s3 + $0x18] sm:$0xff] (!%p243_p3)  ;;  %v643_v12 = vld [vmem:[%s1746_s3 + $0x20] sm:$0xff] (!%p243_p3) }
   0xc   : > { %1311 = vmatprep.subr.bf16.mxu0 (!%p243_p3), %v1310_v3  ;;  %v1322_v11 = vpack.c.bf16 (!%p243_p3), %v642_v10, %v641_v9  ;;  %v644_v13 = vld [vmem:[%s1746_s3 + $0x28] sm:$0xff] (!%p243_p3)  ;;  %v645_v18 = vld [vmem:[%s1746_s3 + $0x30] sm:$0xff] (!%p243_p3)  ;;  %v646_v19 = vld [vmem:[%s1746_s3 + $0x38] sm:$0xff] (!%p243_p3) }
   0xd   : > { %1313 = vmatpush3.bf16.msra.mxu0 (!%p243_p3), %v1310_v3  ;;  %1350 = vmatprep.subr.bf16.mxu1 (!%p243_p3), %v1318_v8  ;;  %v1326_v17 = vpack.c.bf16 (!%p243_p3), %v644_v13, %v643_v12  ;;  %v1330_v22 = vpack.c.bf16 (!%p243_p3), %v646_v19, %v645_v18  ;;  %v647_v23 = vld [vmem:[%s1746_s3 + $0x40] sm:$0xff] (!%p243_p3)  ;;  %v648_v24 = vld [vmem:[%s1746_s3 + $0x48] sm:$0xff] (!%p243_p3)  ;;  %v649_v28 = vld [vmem:[%s1746_s3 + $0x50] sm:$0xff] (!%p243_p3) }
   0xe   : > { %1315 = vmatprep.subr.bf16.mxu0 (!%p243_p3), %v1314_v7  ;;  %1358 = vmatpush3.bf16.msra.mxu1 (!%p243_p3), %v1318_v8  ;;  %v1334_v27 = vpack.c.bf16 (!%p243_p3), %v648_v24, %v647_v23  ;;  %v650_v29 = vld [vmem:[%s1746_s3 + $0x58] sm:$0xff] (!%p243_p3)  ;;  %v651_v33 = vld [vmem:[%s1746_s3 + $0x60] sm:$0xff] (!%p243_p3)  ;;  %v652_v34 = vld [vmem:[%s1746_s3 + $0x68] sm:$0xff] (!%p243_p3) }
   0xf   : > { %1351 = vmatprep.subr.bf16.mxu1 (!%p243_p3), %v1322_v11  ;;  %v1338_v32 = vpack.c.bf16 (!%p243_p3), %v650_v29, %v649_v28  ;;  %v1342_v37 = vpack.c.bf16 (!%p243_p3), %v652_v34, %v651_v33  ;;  %v653_v43 = vld [vmem:[%s1746_s3 + $0x70] sm:$0xff] (!%p243_p3)  ;;  %v654_v44 = vld [vmem:[%s1746_s3 + $0x78] sm:$0xff] (!%p243_p3)  ;;  %v1620_v46 = vld [vmem:[%s1745_s2] ss:$0 sm:$0xff] (!%p243_p3) }
  0x10   : > { %s1761_s22 = smov (!%p299_p5, %s1432_s22), 1  ;;  %s1763_s10 = smov (!%p301_p6, %s1060_s10), 31  ;;  %v1346_v45 = vpack.c.bf16 %v654_v44, %v653_v43 }
  0x11   : > { %s1061_s21 = sshll.u32 %s1761_s22, 5  ;;  %1317 = vmatpush3.bf16.msra.mxu0 %v1314_v7 }
  0x12   : > { %s1538_s28 = sadd.s32 %s1061_s21, %s1763_s10  ;;  %1319 = vmatprep.subr.bf16.mxu0 %v1318_v8  ;;  %1359 = vmatpush3.bf16.msra.mxu1 %v1322_v11 }
  0x13   : > { %s1541_s29 = sshll.u32 %s1538_s28, 3  ;;  %1352 = vmatprep.subr.bf16.mxu1 %v1326_v17 }
  0x14   : > { %s1553_s10 = scalar_lea.vmem %s1743_s0, %s1541_s29  ;;  %s1656_s30 = scalar_lea.vmem %s1749_s6, %s1541_s29 }
  0x15   : > { %v338_v14 = vld [vmem:[%s1553_s10] sm:$0xff]  ;;  %v339_v15 = vld [vmem:[%s1553_s10 + $0x8] sm:$0xff]  ;;  %v340_v16 = vld [vmem:[%s1553_s10 + $0x10] sm:$0xff]  ;;  %s1694_s9 = scalar_lea.vmem %s1748_s5, %s1541_s29 }
  0x16   : > { %1230 = vmatprep.mubr.msk.f32.mxu0 %vm365_vm0, %v338_v14  ;;  %v341_v20 = vld [vmem:[%s1553_s10 + $0x18] sm:$0xff]  ;;  %v342_v21 = vld [vmem:[%s1553_s10 + $0x20] sm:$0xff]  ;;  %1360 = vmatpush3.bf16.msra.mxu1 %v1326_v17  ;;  %v343_v25 = vld [vmem:[%s1553_s10 + $0x28] sm:$0xff] }
  0x17   : > { %1231 = vmatmul.mubr.msk.f32.vlgmr.msra.gmra.mrb[0].mxu0 %vm365_vm0, %v339_v15  ;;  %1353 = vmatprep.subr.bf16.mxu1 %v1330_v22  ;;  %v344_v26 = vld [vmem:[%s1553_s10 + $0x30] sm:$0xff]  ;;  %v345_v30 = vld [vmem:[%s1553_s10 + $0x38] sm:$0xff]  ;;  %v346_v31 = vld [vmem:[%s1553_s10 + $0x40] sm:$0xff] }
  0x18   : > { %1233 = vmatprep.mubr.msk.f32.mxu0 %vm365_vm0, %v340_v16  ;;  %1321 = vmatpush3.bf16.msra.mxu0 %v1318_v8  ;;  %v347_v35 = vld [vmem:[%s1553_s10 + $0x48] sm:$0xff]  ;;  %v348_v36 = vld [vmem:[%s1553_s10 + $0x50] sm:$0xff]  ;;  %v349_v38 = vld [vmem:[%s1553_s10 + $0x58] sm:$0xff] }
  0x19   : > { %1323 = vmatprep.subr.bf16.mxu0 %v1322_v11  ;;  %v350_v39 = vld [vmem:[%s1553_s10 + $0x60] sm:$0xff]  ;;  %v351_v40 = vld [vmem:[%s1553_s10 + $0x68] sm:$0xff]  ;;  %v352_v41 = vld [vmem:[%s1553_s10 + $0x70] sm:$0xff] }
  0x1a   : > { %1361 = vmatpush3.bf16.msra.mxu1 %v1330_v22  ;;  %v353_v42 = vld [vmem:[%s1553_s10 + $0x78] sm:$0xff]  ;;  %s1065_s10 = sshll.u32 %s1538_s28, 2 }
  0x1b   : > { %1234 = vmatmul.mubr.msk.f32.gmra.mrb[2].mxu0 %vm365_vm0, %v341_v20  ;;  %1354 = vmatprep.subr.bf16.mxu1 %v1334_v27  ;;  %s1628_s20 = scalar_lea.vmem %s1747_s4, %s1065_s10 }
  0x1c   : > { %1236 = vmatprep.mubr.msk.f32.mxu0 %vm365_vm0, %v342_v21  ;;  %1325 = vmatpush3.bf16.msra.mxu0 %v1322_v11 }
  0x1d   : > { %1327 = vmatprep.subr.bf16.mxu0 %v1326_v17 }
  0x1e   : > { %1362 = vmatpush3.bf16.msra.mxu1 %v1334_v27 }
  0x1f   : > { %1237 = vmatmul.mubr.msk.f32.gmra.mrb[4].mxu0 %vm365_vm0, %v343_v25  ;;  %1355 = vmatprep.subr.bf16.mxu1 %v1338_v32 }
  0x20   : > { %1239 = vmatprep.mubr.msk.f32.mxu0 %vm365_vm0, %v344_v26  ;;  %1329 = vmatpush3.bf16.msra.mxu0 %v1326_v17 }
  0x21   : > { %1331 = vmatprep.subr.bf16.mxu0 %v1330_v22 }
  0x22   : > { %1363 = vmatpush3.bf16.msra.mxu1 %v1338_v32 }
  0x23   : > { %1240 = vmatmul.mubr.msk.f32.gmra.mrb[6].mxu0 %vm365_vm0, %v345_v30  ;;  %1356 = vmatprep.subr.bf16.mxu1 %v1342_v37 }
  0x24   : > { %1242 = vmatprep.mubr.msk.f32.mxu0 %vm365_vm0, %v346_v31  ;;  %1333 = vmatpush3.bf16.msra.mxu0 %v1330_v22 }
  0x25   : > { %1335 = vmatprep.subr.bf16.mxu0 %v1334_v27 }
  0x26   : > { %1364 = vmatpush3.bf16.msra.mxu1 %v1342_v37 }
  0x27   : > { %1243 = vmatmul.mubr.msk.f32.gmra.mrb[8].mxu0 %vm365_vm0, %v347_v35  ;;  %1357 = vmatprep.subr.bf16.mxu1 %v1346_v45 }
  0x28   : > { %1245 = vmatprep.mubr.msk.f32.mxu0 %vm365_vm0, %v348_v36  ;;  %1337 = vmatpush3.bf16.msra.mxu0 %v1334_v27 }
  0x29   : > { %1339 = vmatprep.subr.bf16.mxu0 %v1338_v32 }
  0x2a   : > { %1365 = vmatpush3.bf16.msra.mxu1 %v1346_v45 }
  0x2b   : > { %1246 = vmatmul.mubr.msk.f32.gmra.mrb[10].mxu0 %vm365_vm0, %v349_v38 }
  0x2c   : > { %1248 = vmatprep.mubr.msk.f32.mxu0 %vm365_vm0, %v350_v39  ;;  %1341 = vmatpush3.bf16.msra.mxu0 %v1338_v32 }
  0x2d   : > { %1343 = vmatprep.subr.bf16.mxu0 %v1342_v37 }
  0x2f   : > { %1249 = vmatmul.mubr.msk.f32.gmra.mrb[12].mxu0 %vm365_vm0, %v351_v40 }
  0x30   : > { %1251 = vmatprep.mubr.msk.f32.mxu0 %vm365_vm0, %v352_v41  ;;  %1345 = vmatpush3.bf16.msra.mxu0 %v1342_v37 }
  0x31   : > { %1347 = vmatprep.subr.bf16.mxu0 %v1346_v45 }
  0x33   : > { %1252 = vmatmul.mubr.msk.f32.gmra.mrb[14].mxu0 %vm365_vm0, %v353_v42 }
  0x34   : > { %1349 = vmatpush3.bf16.msra.mxu0 %v1346_v45 }
  0xea   : > { %v1232_v47 = vpop.f32.mrb[0].mxu0 }
  0xeb   : > { %v486_v48 = vadd.f32 %v1232_v47, %v1620_v46  ;;  %v480_v49 = vpop.f32.mrb[1].mxu0 }
  0xec   : > { %v481_v50 = vadd.f32 %v1620_v46, %v480_v49 }
  0xed   : > { %818 = vadd.xlane.f32.xlu0 %v486_v48 }
  0xee   : > { %v1126_v51 = vpack.c.bf16 %v486_v48, %v481_v50  ;;  %v1235_v52 = vpop.f32.mrb[2].mxu0  ;;  %1286 = vmatprep.mubr.f32.mxu0 %v481_v50 }
  0xef   : > { %v496_v53 = vadd.f32 %v1235_v52, %v1620_v46  ;;  %v490_v54 = vpop.f32.mrb[3].mxu0  ;;  %1287 = vmatmul.mubr.f32.vlgmr.msra.gmra.mrb[16].mxu0 %v486_v48 }
  0xf0   : > { %1127 = vst [vmem:[%s1628_s20] sm:$0xff] %v1126_v51   ;;  %v491_v55 = vadd.f32 %v1620_v46, %v490_v54 }
  0xf1   : > { %822 = vadd.xlane.f32.xlu1 %v496_v53  ;;  %816 = vadd.xlane.f32.xlu0 %v481_v50 }
  0xf2   : > { %v1131_v56 = vpack.c.bf16 %v496_v53, %v491_v55  ;;  %v1238_v57 = vpop.f32.mrb[4].mxu0  ;;  %1289 = vmatprep.mubr.f32.mxu0 %v491_v55 }
  0xf3   : > { %v506_v58 = vadd.f32 %v1238_v57, %v1620_v46  ;;  %v500_v59 = vpop.f32.mrb[5].mxu0  ;;  %1290 = vmatmul.mubr.f32.gmra.mrb[18].mxu0 %v496_v53 }
  0xf4   : > { %1163 = vst [vmem:[%s1628_s20 + $0x8] sm:$0xff] %v1131_v56   ;;  %v501_v60 = vadd.f32 %v1620_v46, %v500_v59 }
  0xf5   : > { %820 = vadd.xlane.f32.xlu1 %v491_v55 }
  0xf6   : > { %v1136_v61 = vpack.c.bf16 %v506_v58, %v501_v60  ;;  %v1241_v62 = vpop.f32.mrb[6].mxu0  ;;  %824 = vadd.xlane.f32.xlu0 %v501_v60  ;;  %1292 = vmatprep.mubr.f32.mxu0 %v501_v60 }
  0xf7   : > { %v516_v63 = vadd.f32 %v1241_v62, %v1620_v46  ;;  %v510_v0 = vpop.f32.mrb[7].mxu0  ;;  %1293 = vmatmul.mubr.f32.gmra.mrb[20].mxu0 %v506_v58 }
  0xf8   : > { %1164 = vst [vmem:[%s1628_s20 + $0x10] sm:$0xff] %v1136_v61   ;;  %v511_v1 = vadd.f32 %v1620_v46, %v510_v0 }
  0xf9   : > { %826 = vadd.xlane.f32.xlu1 %v506_v58 }
  0xfa   : > { %v1141_v2 = vpack.c.bf16 %v516_v63, %v511_v1  ;;  %v1244_v3 = vpop.f32.mrb[8].mxu0  ;;  %1295 = vmatprep.mubr.f32.mxu1 %v511_v1  ;;  %828 = vadd.xlane.f32.xlu0 %v511_v1 }
  0xfb   : > { %v526_v4 = vadd.f32 %v1244_v3, %v1620_v46  ;;  %v520_v5 = vpop.f32.mrb[9].mxu0  ;;  %1296 = vmatmul.mubr.f32.vlgmr.msra.gmra.mrb[0].mxu1 %v516_v63 }
  0xfc   : > { %1165 = vst [vmem:[%s1628_s20 + $0x18] sm:$0xff] %v1141_v2   ;;  %v521_v6 = vadd.f32 %v1620_v46, %v520_v5 }
  0xfd   : > { %830 = vadd.xlane.f32.xlu1 %v516_v63 }
  0xfe   : > { %v1146_v7 = vpack.c.bf16 %v526_v4, %v521_v6  ;;  %v1247_v8 = vpop.f32.mrb[10].mxu0  ;;  %1298 = vmatprep.mubr.f32.mxu1 %v521_v6  ;;  %832 = vadd.xlane.f32.xlu0 %v521_v6 }
  0xff   : > { %v536_v9 = vadd.f32 %v1247_v8, %v1620_v46  ;;  %v530_v10 = vpop.f32.mrb[11].mxu0  ;;  %1299 = vmatmul.mubr.f32.gmra.mrb[2].mxu1 %v526_v4 }
 0x100   : > { %1166 = vst [vmem:[%s1628_s20 + $0x20] sm:$0xff] %v1146_v7   ;;  %v531_v11 = vadd.f32 %v1620_v46, %v530_v10 }
 0x101   : > { %834 = vadd.xlane.f32.xlu1 %v526_v4 }
 0x102   : > { %v1151_v12 = vpack.c.bf16 %v536_v9, %v531_v11  ;;  %v1250_v13 = vpop.f32.mrb[12].mxu0  ;;  %1301 = vmatprep.mubr.f32.mxu1 %v531_v11  ;;  %836 = vadd.xlane.f32.xlu0 %v531_v11 }
 0x103   : > { %v546_v14 = vadd.f32 %v1250_v13, %v1620_v46  ;;  %v540_v15 = vpop.f32.mrb[13].mxu0  ;;  %1302 = vmatmul.mubr.f32.gmra.mrb[4].mxu1 %v536_v9 }
 0x104   : > { %1167 = vst [vmem:[%s1628_s20 + $0x28] sm:$0xff] %v1151_v12   ;;  %v541_v16 = vadd.f32 %v1620_v46, %v540_v15 }
 0x105   : > { %838 = vadd.xlane.f32.xlu1 %v536_v9 }
 0x106   : > { %v1156_v17 = vpack.c.bf16 %v546_v14, %v541_v16  ;;  %v1253_v18 = vpop.f32.mrb[14].mxu0  ;;  %1304 = vmatprep.mubr.f32.mxu1 %v541_v16  ;;  %840 = vadd.xlane.f32.xlu0 %v541_v16 }
 0x107   : > { %v556_v19 = vadd.f32 %v1253_v18, %v1620_v46  ;;  %v550_v20 = vpop.f32.mrb[15].mxu0  ;;  %1305 = vmatmul.mubr.f32.gmra.mrb[6].mxu1 %v546_v14 }
 0x108   : > { %1168 = vst [vmem:[%s1628_s20 + $0x30] sm:$0xff] %v1156_v17   ;;  %v551_v21 = vadd.f32 %v1620_v46, %v550_v20 }
 0x109   : > { %842 = vadd.xlane.f32.xlu1 %v546_v14 }
 0x10a   : > { %v1161_v22 = vpack.c.bf16 %v556_v19, %v551_v21  ;;  %1307 = vmatprep.mubr.f32.mxu1 %v551_v21  ;;  %844 = vadd.xlane.f32.xlu0 %v551_v21 }
 0x10b   : > { %1308 = vmatmul.mubr.f32.gmra.mrb[8].mxu1 %v556_v19 }
 0x10c   : > { %1169 = vst [vmem:[%s1628_s20 + $0x38] sm:$0xff] %v1161_v22  }
 0x10d   : > { %846 = vadd.xlane.f32.xlu1 %v556_v19 }
 0x17a   : > { %v819_v23 = vpop.xlane.xlu0 %818 }
 0x17b   : > { %850 = vst.msk [vmem:[%s1656_s30 + $0x8] sm:$0xff] %vm848_vm1, %v819_v23 }
 0x17e   : > { %v823_v24 = vpop.xlane.xlu1 %822  ;;  %v817_v25 = vpop.xlane.xlu0 %816 }
 0x17f   : > { %852 = vst.msk [vmem:[%s1656_s30 + $0x18] sm:$0xff] %vm848_vm1, %v823_v24  ;;  %849 = vst.msk [vmem:[%s1656_s30] sm:$0xff] %vm848_vm1, %v817_v25 }
 0x182   : > { %v821_v26 = vpop.xlane.xlu1 %820 }
 0x183   : > { %851 = vst.msk [vmem:[%s1656_s30 + $0x10] sm:$0xff] %vm848_vm1, %v821_v26  ;;  %v825_v27 = vpop.xlane.xlu0 %824 }
 0x184   : > { %853 = vst.msk [vmem:[%s1656_s30 + $0x20] sm:$0xff] %vm848_vm1, %v825_v27 }
 0x186   : > { %v827_v28 = vpop.xlane.xlu1 %826 }
 0x187   : > { %854 = vst.msk [vmem:[%s1656_s30 + $0x28] sm:$0xff] %vm848_vm1, %v827_v28  ;;  %v829_v29 = vpop.xlane.xlu0 %828 }
 0x188   : > { %855 = vst.msk [vmem:[%s1656_s30 + $0x30] sm:$0xff] %vm848_vm1, %v829_v29 }
 0x18a   : > { %v831_v30 = vpop.xlane.xlu1 %830 }
 0x18b   : > { %856 = vst.msk [vmem:[%s1656_s30 + $0x38] sm:$0xff] %vm848_vm1, %v831_v30  ;;  %v833_v31 = vpop.xlane.xlu0 %832 }
 0x18c   : > { %857 = vst.msk [vmem:[%s1656_s30 + $0x40] sm:$0xff] %vm848_vm1, %v833_v31 }
 0x18e   : > { %v835_v32 = vpop.xlane.xlu1 %834 }
 0x18f   : > { %858 = vst.msk [vmem:[%s1656_s30 + $0x48] sm:$0xff] %vm848_vm1, %v835_v32  ;;  %v837_v33 = vpop.xlane.xlu0 %836 }
 0x190   : > { %859 = vst.msk [vmem:[%s1656_s30 + $0x50] sm:$0xff] %vm848_vm1, %v837_v33 }
 0x192   : > { %v839_v34 = vpop.xlane.xlu1 %838 }
 0x193   : > { %860 = vst.msk [vmem:[%s1656_s30 + $0x58] sm:$0xff] %vm848_vm1, %v839_v34  ;;  %v841_v35 = vpop.xlane.xlu0 %840 }
 0x194   : > { %861 = vst.msk [vmem:[%s1656_s30 + $0x60] sm:$0xff] %vm848_vm1, %v841_v35 }
 0x196   : > { %v843_v36 = vpop.xlane.xlu1 %842 }
 0x197   : > { %862 = vst.msk [vmem:[%s1656_s30 + $0x68] sm:$0xff] %vm848_vm1, %v843_v36  ;;  %v845_v37 = vpop.xlane.xlu0 %844 }
 0x198   : > { %863 = vst.msk [vmem:[%s1656_s30 + $0x70] sm:$0xff] %vm848_vm1, %v845_v37 }
 0x19a   : > { %v847_v38 = vpop.xlane.xlu1 %846 }
 0x19b   : > { %864 = vst.msk [vmem:[%s1656_s30 + $0x78] sm:$0xff] %vm848_vm1, %v847_v38 }
 0x1c2   : > { %v1288_v39 = vpop.f32.mrb[16].mxu0 }
 0x1c3   : > { %801 = vst.msk [vmem:[%s1694_s9 + $0x8] sm:$0xff] %vm365_vm0, %v1288_v39  ;;  %v721_v40 = vpop.f32.mrb[17].mxu0 }
 0x1c4   : > { %800 = vst.msk [vmem:[%s1694_s9] sm:$0xff] %vm365_vm0, %v721_v40 }
 0x1c6   : > { %v1291_v41 = vpop.f32.mrb[18].mxu0 }
 0x1c7   : > { %803 = vst.msk [vmem:[%s1694_s9 + $0x18] sm:$0xff] %vm365_vm0, %v1291_v41  ;;  %v731_v42 = vpop.f32.mrb[19].mxu0 }
 0x1c8   : > { %802 = vst.msk [vmem:[%s1694_s9 + $0x10] sm:$0xff] %vm365_vm0, %v731_v42 }
 0x1ca   : > { %v1294_v43 = vpop.f32.mrb[20].mxu0 }
 0x1cb   : > { %805 = vst.msk [vmem:[%s1694_s9 + $0x28] sm:$0xff] %vm365_vm0, %v1294_v43  ;;  %v741_v44 = vpop.f32.mrb[21].mxu0 }
 0x1cc   : > { %804 = vst.msk [vmem:[%s1694_s9 + $0x20] sm:$0xff] %vm365_vm0, %v741_v44 }
 0x1ce   : > { %v1297_v45 = vpop.f32.mrb[0].mxu1 }
 0x1cf   : > { %807 = vst.msk [vmem:[%s1694_s9 + $0x38] sm:$0xff] %vm365_vm0, %v1297_v45  ;;  %v751_v46 = vpop.f32.mrb[1].mxu1 }
 0x1d0   : > { %806 = vst.msk [vmem:[%s1694_s9 + $0x30] sm:$0xff] %vm365_vm0, %v751_v46 }
 0x1d2   : > { %v1300_v47 = vpop.f32.mrb[2].mxu1 }
 0x1d3   : > { %809 = vst.msk [vmem:[%s1694_s9 + $0x48] sm:$0xff] %vm365_vm0, %v1300_v47  ;;  %v761_v48 = vpop.f32.mrb[3].mxu1 }
 0x1d4   : > { %808 = vst.msk [vmem:[%s1694_s9 + $0x40] sm:$0xff] %vm365_vm0, %v761_v48 }
 0x1d6   : > { %v1303_v49 = vpop.f32.mrb[4].mxu1 }
 0x1d7   : > { %811 = vst.msk [vmem:[%s1694_s9 + $0x58] sm:$0xff] %vm365_vm0, %v1303_v49  ;;  %v771_v50 = vpop.f32.mrb[5].mxu1 }
 0x1d8   : > { %810 = vst.msk [vmem:[%s1694_s9 + $0x50] sm:$0xff] %vm365_vm0, %v771_v50 }
 0x1da   : > { %v1306_v51 = vpop.f32.mrb[6].mxu1 }
 0x1db   : > { %813 = vst.msk [vmem:[%s1694_s9 + $0x68] sm:$0xff] %vm365_vm0, %v1306_v51  ;;  %v781_v52 = vpop.f32.mrb[7].mxu1 }
 0x1dc   : > { %812 = vst.msk [vmem:[%s1694_s9 + $0x60] sm:$0xff] %vm365_vm0, %v781_v52 }
 0x1de   : > { %v1309_v53 = vpop.f32.mrb[8].mxu1 }
 0x1df   : > { %815 = vst.msk [vmem:[%s1694_s9 + $0x78] sm:$0xff] %vm365_vm0, %v1309_v53  ;;  %v791_v54 = vpop.f32.mrb[9].mxu1 }
 0x1e0   : > { %814 = vst.msk [vmem:[%s1694_s9 + $0x70] sm:$0xff] %vm365_vm0, %v791_v54 }
 0x1e1 PF: > { %s17_s25 = sadd.s32 1, %s1444_s25   ;;  %s1750_s21 = smov %s1436_s23 }
 0x1e2   : > { %p14_p7 = scmp.ge.s32.totalorder %s17_s25, 6   ;;  %s1751_s22 = smov %s1440_s24 }
 0x1e3   : > { %s1752_s23 = smov %s1755_s26  ;;  %s1753_s24 = smov %s1759_s27 }
 0x1e4   :  { %16 = sbr.rel (!%p14_p7) target bundleno = 3 (0x3), region = 90 }

// kernel: nl_block_forward.3
= control target key start
LH: loop header
LB: loop body
LE: loop exit
PB: predicated region body
PF: predicated region fallthrough
CT: control target
= control target key end

     0   :  { %s3089_s13 = smov 0   ;;  %s3091_s14 = smov 0   ;;  %s3804_s0 = inlined_call_operand.vmem [shape: f32[2,256,32], index: 0, kind: input, shape index: {}, may-alias: {0,1}]   ;;  %s3805_s1 = inlined_call_operand.vmem [shape: f32[2,256,32], index: 1, kind: input, shape index: {}, may-alias: {0,1}]   ;;  %s3806_s2 = inlined_call_operand.vmem [shape: bf16[2,256,128], index: 2, kind: input, shape index: {}]   ;;  %s3807_s3 = inlined_call_operand.vmem [shape: f32[2,256,32], index: 3, kind: input, shape index: {}, may-alias: {3,10}]   ;;  %s3808_s4 = inlined_call_operand.vmem [shape: f32[32,128], index: 4, kind: input, shape index: {}]   ;;  %s3809_s5 = inlined_call_operand.vmem [shape: f32[1,128], index: 5, kind: input, shape index: {}]   ;;  %s3810_s6 = inlined_call_operand.vmem [shape: f32[32,128], index: 6, kind: input, shape index: {}]   ;;  %s3811_s7 = inlined_call_operand.vmem [shape: f32[1,128], index: 7, kind: input, shape index: {}]   ;;  %s3812_s8 = inlined_call_operand.vmem [shape: f32[128,32], index: 8, kind: input, shape index: {}]   ;;  %s3813_s9 = inlined_call_operand.vmem [shape: f32[1,32], index: 9, kind: input, shape index: {}]   ;;  %s3814_s10 = inlined_call_operand.vmem [shape: f32[2,256,32], index: 10, kind: output, shape index: {}, may-alias: {3,10}]  }
   0x1   :  { %3817 = sst [smem:[#allocation11_spill]] %s3804_s0  ;;  %s3093_s15 = smov 0  }
   0x2   :  { %s3095_s16 = smov 0   ;;  %s3097_s17 = smov 0  }
   0x3   :  { %s3099_s18 = smov 0   ;;  %s3101_s19 = smov 0  }
   0x4 LB: > { %3818 = sst [smem:[#allocation6_spill]] %s3020_s17  ;;  %s32_s20 = sadd.s32 1, %s3016_s16  ;;  %s3028_s19 = sphi %s3101_s19, %s20_s19   ;;  %s3024_s18 = sphi %s3099_s18, %s3828_s18   ;;  %s3020_s17 = sphi %s3097_s17, %s3827_s17   ;;  %s3016_s16 = sphi %s3095_s16, %s3830_s16   ;;  %s3012_s15 = sphi %s3093_s15, %s3825_s15   ;;  %s3008_s14 = sphi %s3091_s14, %s3824_s14   ;;  %s3004_s13 = sphi %s3089_s13, %s3829_s13  }
   0x5   : > { %3819 = sst [smem:[#allocation7_spill]] %s3024_s18  ;;  %p33_p0 = scmp.ge.s32.totalorder %s32_s20, 2 }
   0x6   : > { %s35_s21 = sadd.s32 1, %s3020_s17  ;;  %p2387_p1 = scmp.ge.s32.totalorder %s3028_s19, 1 }
   0x7   : > { %p391_p2 = scmp.lt.s32.totalorder %s3028_s19, 9  ;;  %s3832_s20 = smov (%p33_p0, %s32_s20), 0 }
   0x8   : > { %3820 = sst [smem:[#allocation8_spill]] %s3832_s20  ;;  %s3834_s21 = smov (!%p33_p0, %s35_s21), %s3020_s17 }
   0x9   : > { %p392_p3 = pnand %p2387_p1, %p391_p2  ;;  %p37_p4 = scmp.ge.s32.totalorder %s3834_s21, 2 }
   0xa   : > { %s39_s22 = sadd.s32 1, %s3024_s18  ;;  %s2388_s23 = sshll.u32 (!%p392_p3), %s3008_s14, 4 }
   0xb   : > { %s3836_s21 = smov (%p37_p4, %s3834_s21), 0  ;;  %s3838_s22 = smov (!%p37_p4, %s39_s22), %s3024_s18 }
   0xc   : > { %3821 = sst [smem:[#allocation9_spill]] %s3836_s21  ;;  %p41_p5 = scmp.ge.s32.totalorder %s3838_s22, 2 }
   0xd   : > { %395 = sbr.rel (%p392_p3) target bundleno = 1673 (0x689), region = 60  ;;  %p465_p6 = scmp.lt.s32.totalorder (!%p392_p3), %s3012_s15, 1 }
   0xe   : > { %s3840_s22 = smov (%p41_p5, %s3838_s22), 0  ;;  %p467_p7 = scmp.lt.s32.totalorder (!%p392_p3), %s2388_s23, 31 }
   0xf   : > { %3822 = sst [smem:[#allocation10_spill]] %s3840_s22  ;;  %s2391_s24 = sshll.u32 (!%p392_p3), %s3004_s13, 4 }
  0x10   : > { %p477_p8 = scmp.lt.s32.totalorder (!%p392_p3), %s2391_s24, 31  ;;  %s3823_s0 = sld [smem:[#allocation11_spill]] (!%p392_p3) }
  0x11   : > { %p2403_p9 = scmp.ne.s32.totalorder (!%p392_p3), %s3004_s13, 0 }
  0x14   : > { %s3842_s15 = smov (!%p465_p6, %s3012_s15), 1  ;;  %s3844_s23 = smov (!%p467_p7, %s2388_s23), 31 }
  0x15   : > { %s2389_s25 = sshll.u32 %s3842_s15, 5  ;;  %s3846_s24 = smov (!%p477_p8, %s2391_s24), 31  ;;  %v535_v0 = vld [vmem:[%s3808_s4] sm:$0xff] (!%p2403_p9)  ;;  %v536_v1 = vld [vmem:[%s3808_s4 + $0x8] sm:$0xff] (!%p2403_p9)  ;;  %v537_v2 = vld [vmem:[%s3808_s4 + $0x10] sm:$0xff] (!%p2403_p9)  ;;  %vm546_vm0 = vcmask (!%p2403_p9), 261120  }
  0x16   : > { %s470_s26 = sadd.s32 %s2389_s25, %s3844_s23  ;;  %s480_s15 = sadd.s32 %s2389_s25, %s3846_s24  ;;  %v2738_v3 = vpack.c.bf16 (!%p2403_p9), %v536_v1, %v535_v0  ;;  %v538_v4 = vld [vmem:[%s3808_s4 + $0x18] sm:$0xff] (!%p2403_p9)  ;;  %vm756_vm1 = vcmask (!%p2403_p9), 7168   ;;  %v3030_v22 = vmov (!%p2403_p9), -inf   ;;  %v3031_v23 = vmov (!%p2403_p9), 0.0   ;;  %v2404_v24 = vld [vmem:[%s3809_s5] ss:$0 sm:$0xff] (!%p2403_p9) }
  0x17   : > { %s2390_s27 = sshll.u32 %s470_s26, 3  ;;  %s2393_s18 = sshll.u32 %s480_s15, 3  ;;  %v2742_v7 = vpack.c.bf16 (!%p2403_p9), %v538_v4, %v537_v2  ;;  %757 = vst.msk [vmem:[#allocation3] sm:$0xff] (!%p2403_p9), %vm756_vm1, %v3030_v22  ;;  %758 = vst.msk [vmem:[#allocation3 + $0x8] sm:$0xff] (!%p2403_p9), %vm756_vm1, %v3030_v22 }
  0x18   : > { %s3137_s30 = scalar_lea.vmem %s3823_s0, %s2390_s27  ;;  %s3142_s22 = scalar_lea.vmem %s3807_s3, %s2390_s27  ;;  %2739 = vmatprep.subr.bf16.mxu0 (!%p2403_p9), %v2738_v3  ;;  %2786 = vmatprep.subr.bf16.mxu1 (!%p2403_p9), %v2738_v3  ;;  %759 = vst.msk [vmem:[#allocation3 + $0x10] sm:$0xff] (!%p2403_p9), %vm756_vm1, %v3030_v22  ;;  %760 = vst.msk [vmem:[#allocation3 + $0x18] sm:$0xff] (!%p2403_p9), %vm756_vm1, %v3030_v22 }
  0x19   : > { %s3147_s20 = scalar_lea.vmem %s3814_s10, %s2390_s27  ;;  %s2396_s23 = sshll.u32 %s480_s15, 2  ;;  %v519_v5 = vld [vmem:[%s3137_s30] sm:$0xff] (!%p2403_p9)  ;;  %2741 = vmatpush3.bf16.msra.mxu0 (!%p2403_p9), %v2738_v3  ;;  %2788 = vmatpush3.bf16.msra.mxu1 (!%p2403_p9), %v2738_v3  ;;  %v520_v8 = vld [vmem:[%s3137_s30 + $0x8] sm:$0xff] (!%p2403_p9)  ;;  %v521_v10 = vld [vmem:[%s3137_s30 + $0x10] sm:$0xff] (!%p2403_p9)  ;;  %761 = vst.msk [vmem:[#allocation3 + $0x20] sm:$0xff] (!%p2403_p9), %vm756_vm1, %v3030_v22 }
  0x1a   : > { %s3152_s28 = scalar_lea.vmem %s3805_s1, %s2393_s18  ;;  %s3157_s11 = scalar_lea.vmem %s3806_s2, %s2396_s23  ;;  %v527_v6 = vld [vmem:[%s3137_s30 + $0x40] sm:$0xff] (!%p2403_p9)  ;;  %2562 = vmatprep.mubr.msk.f32.mxu0 (!%p2403_p9), %vm546_vm0, %v519_v5  ;;  %2743 = vmatprep.subr.bf16.mxu0 (!%p2403_p9), %v2742_v7  ;;  %v528_v9 = vld [vmem:[%s3137_s30 + $0x48] sm:$0xff] (!%p2403_p9)  ;;  %v529_v11 = vld [vmem:[%s3137_s30 + $0x50] sm:$0xff] (!%p2403_p9)  ;;  %762 = vst.msk [vmem:[#allocation3 + $0x28] sm:$0xff] (!%p2403_p9), %vm756_vm1, %v3030_v22 }
  0x1b   : > { %518 = sbr.rel (%p2403_p9) target bundleno = 260 (0x104), region = 64  ;;  %2574 = vmatprep.mubr.msk.f32.mxu1 (!%p2403_p9), %vm546_vm0, %v527_v6  ;;  %2787 = vmatprep.subr.bf16.mxu1 (!%p2403_p9), %v2742_v7  ;;  %v522_v12 = vld [vmem:[%s3137_s30 + $0x18] sm:$0xff] (!%p2403_p9)  ;;  %v523_v14 = vld [vmem:[%s3137_s30 + $0x20] sm:$0xff] (!%p2403_p9)  ;;  %v524_v16 = vld [vmem:[%s3137_s30 + $0x28] sm:$0xff] (!%p2403_p9)  ;;  %763 = vst.msk [vmem:[#allocation3 + $0x30] sm:$0xff] (!%p2403_p9), %vm756_vm1, %v3030_v22 }
  0x1c   : > { %v530_v13 = vld [vmem:[%s3137_s30 + $0x58] sm:$0xff] (!%p2403_p9)  ;;  %v531_v15 = vld [vmem:[%s3137_s30 + $0x60] sm:$0xff] (!%p2403_p9)  ;;  %v532_v17 = vld [vmem:[%s3137_s30 + $0x68] sm:$0xff] (!%p2403_p9)  ;;  %764 = vst.msk [vmem:[#allocation3 + $0x38] sm:$0xff] (!%p2403_p9), %vm756_vm1, %v3030_v22 }
  0x1d   : > { %2745 = vmatpush3.bf16.msra.mxu0 (!%p2403_p9), %v2742_v7  ;;  %2789 = vmatpush3.bf16.msra.mxu1 (!%p2403_p9), %v2742_v7  ;;  %v525_v18 = vld [vmem:[%s3137_s30 + $0x30] sm:$0xff] (!%p2403_p9)  ;;  %v526_v20 = vld [vmem:[%s3137_s30 + $0x38] sm:$0xff] (!%p2403_p9)  ;;  %765 = vst.msk [vmem:[#allocation3 + $0x40] sm:$0xff] (!%p2403_p9), %vm756_vm1, %v3030_v22  ;;  %766 = vst.msk [vmem:[#allocation3 + $0x48] sm:$0xff] (!%p2403_p9), %vm756_vm1, %v3030_v22 }
  0x1e   : > { %v533_v19 = vld [vmem:[%s3137_s30 + $0x70] sm:$0xff] (!%p2403_p9)  ;;  %v534_v21 = vld [vmem:[%s3137_s30 + $0x78] sm:$0xff] (!%p2403_p9)  ;;  %767 = vst.msk [vmem:[#allocation3 + $0x50] sm:$0xff] (!%p2403_p9), %vm756_vm1, %v3030_v22  ;;  %768 = vst.msk [vmem:[#allocation3 + $0x58] sm:$0xff] (!%p2403_p9), %vm756_vm1, %v3030_v22 }
  0x1f   : > { %769 = vst.msk [vmem:[#allocation3 + $0x60] sm:$0xff] (!%p2403_p9), %vm756_vm1, %v3030_v22  ;;  %770 = vst.msk [vmem:[#allocation3 + $0x68] sm:$0xff] (!%p2403_p9), %vm756_vm1, %v3030_v22 }
  0x20   : > { %2563 = vmatmul.mubr.msk.f32.vlgmr.msra.gmra.mrb[0].mxu0 (!%p2403_p9), %vm546_vm0, %v520_v8  ;;  %2575 = vmatmul.mubr.msk.f32.vlgmr.msra.gmra.mrb[0].mxu1 (!%p2403_p9), %vm546_vm0, %v528_v9  ;;  %771 = vst.msk [vmem:[#allocation3 + $0x70] sm:$0xff] (!%p2403_p9), %vm756_vm1, %v3030_v22  ;;  %772 = vst.msk [vmem:[#allocation3 + $0x78] sm:$0xff] (!%p2403_p9), %vm756_vm1, %v3030_v22 }
  0x21   : > { %2565 = vmatprep.mubr.msk.f32.mxu0 (!%p2403_p9), %vm546_vm0, %v521_v10  ;;  %2577 = vmatprep.mubr.msk.f32.mxu1 (!%p2403_p9), %vm546_vm0, %v529_v11  ;;  %773 = vst.msk [vmem:[#allocation4] sm:$0xff] (!%p2403_p9), %vm756_vm1, %v3031_v23  ;;  %774 = vst.msk [vmem:[#allocation4 + $0x8] sm:$0xff] (!%p2403_p9), %vm756_vm1, %v3031_v23 }
  0x22   : > { %775 = vst.msk [vmem:[#allocation4 + $0x10] sm:$0xff] %vm756_vm1, %v3031_v23  ;;  %776 = vst.msk [vmem:[#allocation4 + $0x18] sm:$0xff] %vm756_vm1, %v3031_v23 }
  0x23   : > { %777 = vst.msk [vmem:[#allocation4 + $0x20] sm:$0xff] %vm756_vm1, %v3031_v23  ;;  %778 = vst.msk [vmem:[#allocation4 + $0x28] sm:$0xff] %vm756_vm1, %v3031_v23 }
  0x24   : > { %2566 = vmatmul.mubr.msk.f32.gmra.mrb[2].mxu0 %vm546_vm0, %v522_v12  ;;  %2578 = vmatmul.mubr.msk.f32.gmra.mrb[2].mxu1 %vm546_vm0, %v530_v13  ;;  %779 = vst.msk [vmem:[#allocation4 + $0x30] sm:$0xff] %vm756_vm1, %v3031_v23  ;;  %780 = vst.msk [vmem:[#allocation4 + $0x38] sm:$0xff] %vm756_vm1, %v3031_v23 }
  0x25   : > { %2568 = vmatprep.mubr.msk.f32.mxu0 %vm546_vm0, %v523_v14  ;;  %2580 = vmatprep.mubr.msk.f32.mxu1 %vm546_vm0, %v531_v15  ;;  %781 = vst.msk [vmem:[#allocation4 + $0x40] sm:$0xff] %vm756_vm1, %v3031_v23  ;;  %782 = vst.msk [vmem:[#allocation4 + $0x48] sm:$0xff] %vm756_vm1, %v3031_v23 }
  0x26   : > { %783 = vst.msk [vmem:[#allocation4 + $0x50] sm:$0xff] %vm756_vm1, %v3031_v23  ;;  %784 = vst.msk [vmem:[#allocation4 + $0x58] sm:$0xff] %vm756_vm1, %v3031_v23 }
  0x27   : > { %785 = vst.msk [vmem:[#allocation4 + $0x60] sm:$0xff] %vm756_vm1, %v3031_v23  ;;  %786 = vst.msk [vmem:[#allocation4 + $0x68] sm:$0xff] %vm756_vm1, %v3031_v23 }
  0x28   : > { %2569 = vmatmul.mubr.msk.f32.gmra.mrb[4].mxu0 %vm546_vm0, %v524_v16  ;;  %2581 = vmatmul.mubr.msk.f32.gmra.mrb[4].mxu1 %vm546_vm0, %v532_v17  ;;  %787 = vst.msk [vmem:[#allocation4 + $0x70] sm:$0xff] %vm756_vm1, %v3031_v23  ;;  %788 = vst.msk [vmem:[#allocation4 + $0x78] sm:$0xff] %vm756_vm1, %v3031_v23 }
  0x29   : > { %2571 = vmatprep.mubr.msk.f32.mxu0 %vm546_vm0, %v525_v18  ;;  %2583 = vmatprep.mubr.msk.f32.mxu1 %vm546_vm0, %v533_v19  ;;  %789 = vst [vmem:[#allocation5] sm:$0xff] %v3031_v23  ;;  %790 = vst [vmem:[#allocation5 + $0x8] sm:$0xff] %v3031_v23 }
  0x2a   : > { %791 = vst [vmem:[#allocation5 + $0x10] sm:$0xff] %v3031_v23  ;;  %792 = vst [vmem:[#allocation5 + $0x18] sm:$0xff] %v3031_v23 }
  0x2b   : > { %793 = vst [vmem:[#allocation5 + $0x20] sm:$0xff] %v3031_v23  ;;  %794 = vst [vmem:[#allocation5 + $0x28] sm:$0xff] %v3031_v23 }
  0x2c   : > { %2572 = vmatmul.mubr.msk.f32.gmra.mrb[6].mxu0 %vm546_vm0, %v526_v20  ;;  %2584 = vmatmul.mubr.msk.f32.gmra.mrb[6].mxu1 %vm546_vm0, %v534_v21  ;;  %795 = vst [vmem:[#allocation5 + $0x30] sm:$0xff] %v3031_v23  ;;  %796 = vst [vmem:[#allocation5 + $0x38] sm:$0xff] %v3031_v23 }
  0x2d   : > { %797 = vst [vmem:[#allocation5 + $0x40] sm:$0xff] %v3031_v23  ;;  %798 = vst [vmem:[#allocation5 + $0x48] sm:$0xff] %v3031_v23 }
  0x2e   : > { %799 = vst [vmem:[#allocation5 + $0x50] sm:$0xff] %v3031_v23  ;;  %800 = vst [vmem:[#allocation5 + $0x58] sm:$0xff] %v3031_v23 }
  0x2f   : > { %801 = vst [vmem:[#allocation5 + $0x60] sm:$0xff] %v3031_v23  ;;  %802 = vst [vmem:[#allocation5 + $0x68] sm:$0xff] %v3031_v23 }
  0x30   : > { %803 = vst [vmem:[#allocation5 + $0x70] sm:$0xff] %v3031_v23  ;;  %804 = vst [vmem:[#allocation5 + $0x78] sm:$0xff] %v3031_v23 }
  0xf3   : > { %v2564_v25 = vpop.f32.mrb[0].mxu0  ;;  %v2576_v26 = vpop.f32.mrb[0].mxu1 }
  0xf4   : > { %v667_v27 = vadd.f32 %v2564_v25, %v2404_v24  ;;  %v707_v28 = vadd.f32 %v2576_v26, %v2404_v24  ;;  %v661_v29 = vpop.f32.mrb[1].mxu0  ;;  %v701_v30 = vpop.f32.mrb[1].mxu1 }
  0xf5   : > { %v662_v31 = vadd.f32 %v2404_v24, %v661_v29  ;;  %v702_v32 = vadd.f32 %v2404_v24, %v701_v30 }
  0xf6   : > { %741 = vst [vmem:[#allocation2 + $0x8] sm:$0xff] %v667_v27  ;;  %749 = vst [vmem:[#allocation2 + $0x48] sm:$0xff] %v707_v28 }
  0xf7   : > { %740 = vst [vmem:[#allocation2] sm:$0xff] %v662_v31  ;;  %748 = vst [vmem:[#allocation2 + $0x40] sm:$0xff] %v702_v32  ;;  %v2567_v33 = vpop.f32.mrb[2].mxu0  ;;  %v2579_v34 = vpop.f32.mrb[2].mxu1 }
  0xf8   : > { %v677_v35 = vadd.f32 %v2567_v33, %v2404_v24  ;;  %v717_v36 = vadd.f32 %v2579_v34, %v2404_v24  ;;  %v671_v37 = vpop.f32.mrb[3].mxu0  ;;  %v711_v38 = vpop.f32.mrb[3].mxu1 }
  0xf9   : > { %v672_v39 = vadd.f32 %v2404_v24, %v671_v37  ;;  %v712_v40 = vadd.f32 %v2404_v24, %v711_v38 }
  0xfa   : > { %743 = vst [vmem:[#allocation2 + $0x18] sm:$0xff] %v677_v35  ;;  %751 = vst [vmem:[#allocation2 + $0x58] sm:$0xff] %v717_v36 }
  0xfb   : > { %742 = vst [vmem:[#allocation2 + $0x10] sm:$0xff] %v672_v39  ;;  %750 = vst [vmem:[#allocation2 + $0x50] sm:$0xff] %v712_v40  ;;  %v2570_v41 = vpop.f32.mrb[4].mxu0  ;;  %v2582_v42 = vpop.f32.mrb[4].mxu1 }
  0xfc   : > { %v687_v43 = vadd.f32 %v2570_v41, %v2404_v24  ;;  %v727_v44 = vadd.f32 %v2582_v42, %v2404_v24  ;;  %v681_v45 = vpop.f32.mrb[5].mxu0  ;;  %v721_v46 = vpop.f32.mrb[5].mxu1 }
  0xfd   : > { %v682_v47 = vadd.f32 %v2404_v24, %v681_v45  ;;  %v722_v48 = vadd.f32 %v2404_v24, %v721_v46 }
  0xfe   : > { %745 = vst [vmem:[#allocation2 + $0x28] sm:$0xff] %v687_v43  ;;  %753 = vst [vmem:[#allocation2 + $0x68] sm:$0xff] %v727_v44 }
  0xff   : > { %744 = vst [vmem:[#allocation2 + $0x20] sm:$0xff] %v682_v47  ;;  %752 = vst [vmem:[#allocation2 + $0x60] sm:$0xff] %v722_v48  ;;  %v2573_v49 = vpop.f32.mrb[6].mxu0  ;;  %v2585_v50 = vpop.f32.mrb[6].mxu1 }
 0x100   : > { %v697_v51 = vadd.f32 %v2573_v49, %v2404_v24  ;;  %v737_v52 = vadd.f32 %v2585_v50, %v2404_v24  ;;  %v691_v53 = vpop.f32.mrb[7].mxu0  ;;  %v731_v54 = vpop.f32.mrb[7].mxu1 }
 0x101   : > { %v692_v55 = vadd.f32 %v2404_v24, %v691_v53  ;;  %v732_v56 = vadd.f32 %v2404_v24, %v731_v54 }
 0x102   : > { %747 = vst [vmem:[#allocation2 + $0x38] sm:$0xff] %v697_v51  ;;  %755 = vst [vmem:[#allocation2 + $0x78] sm:$0xff] %v737_v52 }
 0x103   : > { %746 = vst [vmem:[#allocation2 + $0x30] sm:$0xff] %v692_v55  ;;  %754 = vst [vmem:[#allocation2 + $0x70] sm:$0xff] %v732_v56 }
 0x104 PF: > { %v821_v57 = vld [vmem:[%s3810_s6] sm:$0xff]  ;;  %v822_v58 = vld [vmem:[%s3810_s6 + $0x8] sm:$0xff]  ;;  %v823_v59 = vld [vmem:[%s3810_s6 + $0x10] sm:$0xff]  ;;  %vm832_vm2 = vcmask 261120   ;;  %vm1475_vm3 = vcmask 7168   ;;  %p2446_p10 = scmp.ne.s32.totalorder %s3004_s13, 1 }
 0x105   : > { %v2746_v60 = vpack.c.bf16 %v822_v58, %v821_v57  ;;  %v824_v61 = vld [vmem:[%s3810_s6 + $0x18] sm:$0xff]  ;;  %v805_v62 = vld [vmem:[%s3152_s28] sm:$0xff]  ;;  %v806_v0 = vld [vmem:[%s3152_s28 + $0x8] sm:$0xff] }
 0x106   : > { %v2750_v63 = vpack.c.bf16 %v824_v61, %v823_v59  ;;  %2594 = vmatprep.mubr.msk.f32.mxu0 %vm832_vm2, %v805_v62  ;;  %v807_v1 = vld [vmem:[%s3152_s28 + $0x10] sm:$0xff]  ;;  %v808_v2 = vld [vmem:[%s3152_s28 + $0x18] sm:$0xff]  ;;  %v809_v3 = vld [vmem:[%s3152_s28 + $0x20] sm:$0xff] }
 0x107   : > { %2747 = vmatprep.subr.bf16.mxu0 %v2746_v60  ;;  %v810_v4 = vld [vmem:[%s3152_s28 + $0x28] sm:$0xff]  ;;  %v811_v5 = vld [vmem:[%s3152_s28 + $0x30] sm:$0xff]  ;;  %v812_v6 = vld [vmem:[%s3152_s28 + $0x38] sm:$0xff] }
 0x108   : > { %2749 = vmatpush3.bf16.msra.mxu0 %v2746_v60  ;;  %v813_v7 = vld [vmem:[%s3152_s28 + $0x40] sm:$0xff]  ;;  %v814_v8 = vld [vmem:[%s3152_s28 + $0x48] sm:$0xff]  ;;  %v815_v9 = vld [vmem:[%s3152_s28 + $0x50] sm:$0xff] }
 0x109   : > { %2751 = vmatprep.subr.bf16.mxu0 %v2750_v63  ;;  %v816_v10 = vld [vmem:[%s3152_s28 + $0x58] sm:$0xff]  ;;  %v817_v11 = vld [vmem:[%s3152_s28 + $0x60] sm:$0xff]  ;;  %v818_v12 = vld [vmem:[%s3152_s28 + $0x68] sm:$0xff] }
 0x10a   : > { %v819_v13 = vld [vmem:[%s3152_s28 + $0x70] sm:$0xff]  ;;  %v820_v14 = vld [vmem:[%s3152_s28 + $0x78] sm:$0xff]  ;;  %v1026_v15 = vld [vmem:[#allocation2] sm:$0xff] }
 0x10b   : > { %v1027_v16 = vld [vmem:[#allocation2 + $0x8] sm:$0xff]  ;;  %v2421_v18 = vld [vmem:[%s3811_s7] ss:$0 sm:$0xff]  ;;  %v1028_v59 = vld [vmem:[#allocation2 + $0x10] sm:$0xff] }
 0x10c   : > { %2753 = vmatpush3.bf16.msra.mxu0 %v2750_v63  ;;  %v1042_v17 = vpack.c.bf16 %v1027_v16, %v1026_v15  ;;  %v1029_v60 = vld [vmem:[#allocation2 + $0x18] sm:$0xff]  ;;  %v1030_v61 = vld [vmem:[#allocation2 + $0x20] sm:$0xff]  ;;  %v1031_v62 = vld [vmem:[#allocation2 + $0x28] sm:$0xff] }
 0x10d   : > { %v1043_v63 = vpack.c.bf16 %v1029_v60, %v1028_v59 }
 0x10e   : > { %2634 = vmatprep.mubr.bf16.mxu1 %v1042_v17 }
 0x10f   : > { %2595 = vmatmul.mubr.msk.f32.vlgmr.msra.gmra.mrb[0].mxu0 %vm832_vm2, %v806_v0  ;;  %v1044_v0 = vpack.c.bf16 %v1031_v62, %v1030_v61  ;;  %v3395_v62 = vld [vmem:[#allocation3 + $0x40] sm:$0xff] }
 0x110   : > { %2597 = vmatprep.mubr.msk.f32.mxu0 %vm832_vm2, %v807_v1  ;;  %v1032_v1 = vld [vmem:[#allocation2 + $0x30] sm:$0xff] }
 0x113   : > { %2598 = vmatmul.mubr.msk.f32.gmra.mrb[2].mxu0 %vm832_vm2, %v808_v2  ;;  %v1033_v2 = vld [vmem:[#allocation2 + $0x38] sm:$0xff] }
 0x114   : > { %2600 = vmatprep.mubr.msk.f32.mxu0 %vm832_vm2, %v809_v3  ;;  %v1034_v3 = vld [vmem:[#allocation2 + $0x40] sm:$0xff] }
 0x117   : > { %2601 = vmatmul.mubr.msk.f32.gmra.mrb[4].mxu0 %vm832_vm2, %v810_v4  ;;  %v1035_v4 = vld [vmem:[#allocation2 + $0x48] sm:$0xff] }
 0x118   : > { %2603 = vmatprep.mubr.msk.f32.mxu0 %vm832_vm2, %v811_v5  ;;  %v1045_v5 = vpack.c.bf16 %v1033_v2, %v1032_v1 }
 0x11b   : > { %2604 = vmatmul.mubr.msk.f32.gmra.mrb[6].mxu0 %vm832_vm2, %v812_v6  ;;  %v1046_v6 = vpack.c.bf16 %v1035_v4, %v1034_v3 }
 0x11c   : > { %2606 = vmatprep.mubr.msk.f32.mxu0 %vm832_vm2, %v813_v7  ;;  %v1036_v7 = vld [vmem:[#allocation2 + $0x50] sm:$0xff] }
 0x11f   : > { %2607 = vmatmul.mubr.msk.f32.gmra.mrb[8].mxu0 %vm832_vm2, %v814_v8  ;;  %v1037_v8 = vld [vmem:[#allocation2 + $0x58] sm:$0xff] }
 0x120   : > { %2609 = vmatprep.mubr.msk.f32.mxu0 %vm832_vm2, %v815_v9  ;;  %v1038_v9 = vld [vmem:[#allocation2 + $0x60] sm:$0xff] }
 0x123   : > { %2610 = vmatmul.mubr.msk.f32.gmra.mrb[10].mxu0 %vm832_vm2, %v816_v10  ;;  %v1039_v10 = vld [vmem:[#allocation2 + $0x68] sm:$0xff] }
 0x124   : > { %2612 = vmatprep.mubr.msk.f32.mxu0 %vm832_vm2, %v817_v11  ;;  %v1047_v11 = vpack.c.bf16 %v1037_v8, %v1036_v7  ;;  %v3417_v7 = vld [vmem:[#allocation3 + $0x48] sm:$0xff] }
 0x127   : > { %2613 = vmatmul.mubr.msk.f32.gmra.mrb[12].mxu0 %vm832_vm2, %v818_v12  ;;  %v1048_v12 = vpack.c.bf16 %v1039_v10, %v1038_v9 }
 0x128   : > { %2615 = vmatprep.mubr.msk.f32.mxu0 %vm832_vm2, %v819_v13  ;;  %v1040_v13 = vld [vmem:[#allocation2 + $0x70] sm:$0xff] }
 0x12b   : > { %2616 = vmatmul.mubr.msk.f32.gmra.mrb[14].mxu0 %vm832_vm2, %v820_v14  ;;  %v1041_v14 = vld [vmem:[#allocation2 + $0x78] sm:$0xff] }
 0x12c   : > { %v1049_v15 = vpack.c.bf16 %v1041_v14, %v1040_v13  ;;  %v3429_v13 = vld [vmem:[#allocation3 + $0x60] sm:$0xff]  ;;  %v2875_v14 = vld [vmem:[%s3157_s11 + $0x38] sm:$0xff]  }
 0x1e2   : > { %v2596_v19 = vpop.f32.mrb[0].mxu0 }
 0x1e3   : > { %v953_v20 = vadd.f32 %v2596_v19, %v2421_v18  ;;  %v947_v21 = vpop.f32.mrb[1].mxu0 }
 0x1e4   : > { %v948_v22 = vadd.f32 %v2421_v18, %v947_v21 }
 0x1e6   : > { %v1050_v23 = vpack.c.bf16 %v953_v20, %v948_v22  ;;  %v2599_v24 = vpop.f32.mrb[2].mxu0 }
 0x1e7   : > { %v963_v25 = vadd.f32 %v2599_v24, %v2421_v18  ;;  %v957_v26 = vpop.f32.mrb[3].mxu0 }
 0x1e8   : > { %2618 = vmatprep.subr.bf16.mxu1 %v1050_v23  ;;  %v958_v27 = vadd.f32 %v2421_v18, %v957_v26 }
 0x1e9   : > { %2619 = vmatpush3.bf16.xpose.msra.mxu1 %v1050_v23 }
 0x1ea   : > { %v1051_v28 = vpack.c.bf16 %v963_v25, %v958_v27  ;;  %v2602_v29 = vpop.f32.mrb[4].mxu0  ;;  %v3032_v25 = vmov 0  }
 0x1eb   : > { %v973_v30 = vadd.f32 %v2602_v29, %v2421_v18  ;;  %v967_v31 = vpop.f32.mrb[5].mxu0  ;;  %2867 = vset.pattern.permute.xlu1 %v3032_v25  ;;  %2866 = vset.pattern.permute.xlu0 %v3032_v25 }
 0x1ec   : > { %2620 = vmatprep.subr.bf16.mxu1 %v1051_v28  ;;  %v968_v32 = vadd.f32 %v2421_v18, %v967_v31 }
 0x1ee   : > { %v1052_v33 = vpack.c.bf16 %v973_v30, %v968_v32  ;;  %v2605_v34 = vpop.f32.mrb[6].mxu0 }
 0x1ef   : > { %v983_v35 = vadd.f32 %v2605_v34, %v2421_v18  ;;  %v977_v36 = vpop.f32.mrb[7].mxu0  ;;  %v2869_v34 = vld [vmem:[%s3157_s11 + $0x8] sm:$0xff]  }
 0x1f0   : > { %v978_v37 = vadd.f32 %v2421_v18, %v977_v36  ;;  %v3338_v36 = vld [vmem:[#allocation3] sm:$0xff] }
 0x1f1   : > { %2621 = vmatpush3.bf16.xpose.msra.mxu1 %v1051_v28 }
 0x1f2   : > { %2622 = vmatprep.subr.bf16.mxu1 %v1052_v33  ;;  %v1053_v38 = vpack.c.bf16 %v983_v35, %v978_v37  ;;  %v2608_v39 = vpop.f32.mrb[8].mxu0  ;;  %v3336_v35 = vld [vmem:[#allocation3 + $0x10] sm:$0xff] }
 0x1f3   : > { %v993_v40 = vadd.f32 %v2608_v39, %v2421_v18  ;;  %v987_v41 = vpop.f32.mrb[9].mxu0 }
 0x1f4   : > { %v988_v42 = vadd.f32 %v2421_v18, %v987_v41  ;;  %v3346_v41 = vld [vmem:[#allocation3 + $0x18] sm:$0xff] }
 0x1f6   : > { %v1054_v43 = vpack.c.bf16 %v993_v40, %v988_v42  ;;  %v2611_v44 = vpop.f32.mrb[10].mxu0  ;;  %v3351_v42 = vld [vmem:[#allocation3 + $0x8] sm:$0xff] }
 0x1f7   : > { %v1003_v45 = vadd.f32 %v2611_v44, %v2421_v18  ;;  %v997_v46 = vpop.f32.mrb[11].mxu0 }
 0x1f8   : > { %v998_v47 = vadd.f32 %v2421_v18, %v997_v46 }
 0x1f9   : > { %2623 = vmatpush3.bf16.xpose.msra.mxu1 %v1052_v33  ;;  %v2868_v33 = vld [vmem:[%s3157_s11] sm:$0xff]  }
 0x1fa   : > { %2624 = vmatprep.subr.bf16.mxu1 %v1053_v38  ;;  %v1055_v48 = vpack.c.bf16 %v1003_v45, %v998_v47  ;;  %v2614_v49 = vpop.f32.mrb[12].mxu0  ;;  %2650 = vmatprep.subr.bf16.mxu0 %v2868_v33 }
 0x1fb   : > { %v1013_v50 = vadd.f32 %v2614_v49, %v2421_v18  ;;  %v1007_v51 = vpop.f32.mrb[13].mxu0  ;;  %2651 = vmatpush3.bf16.msra.mxu0 %v2868_v33  ;;  %v2871_v49 = vld [vmem:[%s3157_s11 + $0x18] sm:$0xff]  }
 0x1fc   : > { %v1008_v52 = vadd.f32 %v2421_v18, %v1007_v51  ;;  %2652 = vmatprep.subr.bf16.mxu0 %v2869_v34 }
 0x1fe   : > { %v1056_v53 = vpack.c.bf16 %v1013_v50, %v1008_v52  ;;  %v2617_v54 = vpop.f32.mrb[14].mxu0  ;;  %v3371_v50 = vld [vmem:[#allocation3 + $0x38] sm:$0xff] }
 0x1ff   : > { %v1023_v55 = vadd.f32 %v2617_v54, %v2421_v18  ;;  %v1017_v56 = vpop.f32.mrb[15].mxu0  ;;  %2653 = vmatpush3.bf16.msra.mxu0 %v2869_v34 }
 0x200   : > { %v1018_v57 = vadd.f32 %v2421_v18, %v1017_v56  ;;  %v2872_v56 = vld [vmem:[%s3157_s11 + $0x20] sm:$0xff]  }
 0x201   : > { %2625 = vmatpush3.bf16.xpose.msra.mxu1 %v1053_v38 }
 0x202   : > { %2626 = vmatprep.subr.bf16.mxu1 %v1054_v43  ;;  %v1057_v58 = vpack.c.bf16 %v1023_v55, %v1018_v57  ;;  %v3380_v55 = vld [vmem:[#allocation3 + $0x30] sm:$0xff]  ;;  %v3385_v57 = vld [vmem:[#allocation3 + $0x28] sm:$0xff] }
 0x209   : > { %2627 = vmatpush3.bf16.xpose.msra.mxu1 %v1054_v43  ;;  %v2870_v43 = vld [vmem:[%s3157_s11 + $0x10] sm:$0xff]  }
 0x20a   : > { %2628 = vmatprep.subr.bf16.mxu1 %v1055_v48  ;;  %2654 = vmatprep.subr.bf16.mxu0 %v2870_v43 }
 0x20b   : > { %2655 = vmatpush3.bf16.msra.mxu0 %v2870_v43  ;;  %v1168_v43 = vld [vmem:[#allocation3 + $0x68] sm:$0xff] }
 0x20c   : > { %2656 = vmatprep.subr.bf16.mxu0 %v2871_v49 }
 0x20f   : > { %2657 = vmatpush3.bf16.msra.mxu0 %v2871_v49 }
 0x210   : > { %2658 = vmatprep.subr.bf16.mxu0 %v2872_v56 }
 0x211   : > { %2629 = vmatpush3.bf16.xpose.msra.mxu1 %v1055_v48  ;;  %v3366_v48 = vld [vmem:[#allocation3 + $0x20] sm:$0xff] }
 0x212   : > { %2630 = vmatprep.subr.bf16.mxu1 %v1056_v53 }
 0x213   : > { %2659 = vmatpush3.bf16.msra.mxu0 %v2872_v56 }
 0x219   : > { %2631 = vmatpush3.bf16.xpose.msra.mxu1 %v1056_v53 }
 0x21a   : > { %2632 = vmatprep.subr.bf16.mxu1 %v1057_v58 }
 0x221   : > { %2633 = vmatpush3.bf16.xpose.msra.mxu1 %v1057_v58 }
 0x228   : > { %2635 = vmatmul.mubr.bf16.vlgmr.msra.gmra.mrb[0].mxu1 %v1043_v63  ;;  %v2873_v63 = vld [vmem:[%s3157_s11 + $0x28] sm:$0xff]  }
 0x229   : > { %2638 = vmatprep.mubr.bf16.mxu1 %v1044_v0  ;;  %v3401_v0 = vld [vmem:[#allocation3 + $0x58] sm:$0xff]  ;;  %2660 = vmatprep.subr.bf16.mxu0 %v2873_v63 }
 0x22a   : > { %2661 = vmatpush3.bf16.msra.mxu0 %v2873_v63 }
 0x230   : > { %2639 = vmatmul.mubr.bf16.gmra.mrb[4].mxu1 %v1045_v5  ;;  %v3411_v5 = vld [vmem:[#allocation3 + $0x50] sm:$0xff] }
 0x231   : > { %2642 = vmatprep.mubr.bf16.mxu1 %v1046_v6  ;;  %v2874_v6 = vld [vmem:[%s3157_s11 + $0x30] sm:$0xff]  }
 0x232   : > { %2662 = vmatprep.subr.bf16.mxu0 %v2874_v6 }
 0x233   : > { %2663 = vmatpush3.bf16.msra.mxu0 %v2874_v6 }
 0x234   : > { %2664 = vmatprep.subr.bf16.mxu0 %v2875_v14 }
 0x237   : > { %2665 = vmatpush3.bf16.msra.mxu0 %v2875_v14 }
 0x238   : > { %2643 = vmatmul.mubr.bf16.gmra.mrb[8].mxu1 %v1047_v11 }
 0x239   : > { %2646 = vmatprep.mubr.bf16.mxu1 %v1048_v12 }
 0x240   : > { %2647 = vmatmul.mubr.bf16.gmra.mrb[12].mxu1 %v1049_v15  ;;  %v3435_v15 = vld [vmem:[#allocation3 + $0x78] sm:$0xff] }
 0x2fb   : > { %v3286_v16 = vpop.f32.mrb[0].mxu1 }
 0x2fc   : > { %1175 = vmax.xlane.f32.xlu1 %v3286_v16  ;;  %v3289_v17 = vpop.f32.mrb[1].mxu1 }
 0x2fd   : > { %1171 = vmax.xlane.f32.xlu0 %v3289_v17  ;;  %v3292_v18 = vpop.f32.mrb[2].mxu1 }
 0x2fe   : > { %v3294_v19 = vpop.f32.mrb[3].mxu1 }
 0x300   : > { %1177 = vmax.xlane.f32.xlu1 %v3292_v18 }
 0x301   : > { %1173 = vmax.xlane.f32.xlu0 %v3294_v19 }
 0x303   : > { %v3298_v20 = vpop.f32.mrb[4].mxu1 }
 0x304   : > { %v3300_v21 = vpop.f32.mrb[5].mxu1 }
 0x305   : > { %1179 = vmax.xlane.f32.xlu0 %v3300_v21  ;;  %v3303_v22 = vpop.f32.mrb[6].mxu1 }
 0x306   : > { %1185 = vmax.xlane.f32.xlu1 %v3303_v22  ;;  %v3306_v23 = vpop.f32.mrb[7].mxu1 }
 0x309   : > { %1183 = vmax.xlane.f32.xlu0 %v3298_v20 }
 0x30a   : > { %1181 = vmax.xlane.f32.xlu1 %v3306_v23 }
 0x30b   : > { %v3310_v24 = vpop.f32.mrb[8].mxu1 }
 0x30c   : > { %v3312_v26 = vpop.f32.mrb[9].mxu1 }
 0x30d   : > { %v3314_v27 = vpop.f32.mrb[10].mxu1  ;;  %1187 = vmax.xlane.f32.xlu0 %v3312_v26 }
 0x30e   : > { %1193 = vmax.xlane.f32.xlu1 %v3314_v27  ;;  %v3318_v28 = vpop.f32.mrb[11].mxu1 }
 0x311   : > { %1191 = vmax.xlane.f32.xlu0 %v3310_v24 }
 0x312   : > { %1189 = vmax.xlane.f32.xlu1 %v3318_v28 }
 0x313   : > { %v3322_v29 = vpop.f32.mrb[12].mxu1 }
 0x314   : > { %v3324_v30 = vpop.f32.mrb[13].mxu1 }
 0x315   : > { %v3326_v31 = vpop.f32.mrb[14].mxu1  ;;  %1195 = vmax.xlane.f32.xlu0 %v3324_v30 }
 0x316   : > { %1201 = vmax.xlane.f32.xlu1 %v3326_v31  ;;  %v3330_v32 = vpop.f32.mrb[15].mxu1 }
 0x319   : > { %1199 = vmax.xlane.f32.xlu0 %v3322_v29 }
 0x31a   : > { %1197 = vmax.xlane.f32.xlu1 %v3330_v32 }
 0x389   : > { %v1176_v37 = vpop.xlane.xlu1 %1175 }
 0x38a   : > { %v3341_v38 = vmax.f32 %v3336_v35, %v1176_v37  ;;  %v1172_v39 = vpop.xlane.xlu0 %1171 }
 0x38b   : > { %v3344_v40 = vmax.f32 %v3338_v36, %v1172_v39 }
 0x38c   : > { %1807 = vst.msk [vmem:[#allocation3 + $0x10] sm:$0xff] %vm1475_vm3, %v3341_v38  ;;  %1279 = vperm.xlu1 %2867, %v3341_v38  }
 0x38d   : > { %1805 = vst.msk [vmem:[#allocation3] sm:$0xff] %vm1475_vm3, %v3344_v40  ;;  %v1178_v44 = vpop.xlane.xlu1 %1177  ;;  %1269 = vperm.xlu0 %2866, %v3344_v40   ;;  %v1219_v9 = vsub.f32 %v3338_v36, %v3344_v40  ;;  %v3448_v40 = vld [vmem:[#allocation3 + $0x70] sm:$0xff] }
 0x38e   : > { %v3358_v45 = vmax.f32 %v3346_v41, %v1178_v44  ;;  %v1174_v46 = vpop.xlane.xlu0 %1173 }
 0x38f   : > { %v3361_v47 = vmax.f32 %v3351_v42, %v1174_v46  ;;  %v1235_v33 = vmul.f32 1.442695, %v1219_v9 }
 0x390   : > { %1808 = vst.msk [vmem:[#allocation3 + $0x18] sm:$0xff] %vm1475_vm3, %v3358_v45  ;;  %1284 = vperm.xlu1 %2867, %v3358_v45   ;;  %v1222_v34 = vsub.f32 %v3346_v41, %v3358_v45 }
 0x391   : > { %1806 = vst.msk [vmem:[#allocation3 + $0x8] sm:$0xff] %vm1475_vm3, %v3361_v47  ;;  %v1220_v44 = vsub.f32 %v3351_v42, %v3361_v47  ;;  %2876 = vpow2.f32 %v1235_v33 }
 0x392   : > { %v1180_v51 = vpop.xlane.xlu0 %1179  ;;  %v1241_v46 = vmul.f32 1.442695, %v1222_v34 }
 0x393   : > { %v3374_v52 = vmax.f32 %v3366_v48, %v1180_v51  ;;  %v1186_v53 = vpop.xlane.xlu1 %1185 }
 0x394   : > { %v3377_v54 = vmax.f32 %v3371_v50, %v1186_v53  ;;  %1274 = vperm.xlu1 %2867, %v3361_v47   ;;  %v1221_v47 = vsub.f32 %v3336_v35, %v3341_v38  ;;  %2878 = vpow2.f32 %v1241_v46 }
 0x395   : > { %1809 = vst.msk [vmem:[#allocation3 + $0x20] sm:$0xff] %vm1475_vm3, %v3374_v52  ;;  %v1223_v63 = vsub.f32 %v3366_v48, %v3374_v52 }
 0x396   : > { %1812 = vst.msk [vmem:[#allocation3 + $0x38] sm:$0xff] %vm1475_vm3, %v3377_v54  ;;  %v1184_v58 = vpop.xlane.xlu0 %1183 }
 0x397   : > { %v3390_v59 = vmax.f32 %v3380_v55, %v1184_v58  ;;  %v1182_v60 = vpop.xlane.xlu1 %1181  ;;  %v1237_v58 = vmul.f32 1.442695, %v1220_v44 }
 0x398   : > { %v3393_v61 = vmax.f32 %v3385_v57, %v1182_v60 }
 0x399   : > { %1811 = vst.msk [vmem:[#allocation3 + $0x30] sm:$0xff] %vm1475_vm3, %v3390_v59  ;;  %1299 = vperm.xlu1 %2867, %v3390_v59   ;;  %2880 = vpow2.f32 %v1237_v58 }
 0x39a   : > { %1810 = vst.msk [vmem:[#allocation3 + $0x28] sm:$0xff] %vm1475_vm3, %v3393_v61  ;;  %v1188_v1 = vpop.xlane.xlu0 %1187  ;;  %v1224_v49 = vsub.f32 %v3385_v57, %v3393_v61  ;;  %v1226_v57 = vsub.f32 %v3371_v50, %v3377_v54  ;;  %v1243_v50 = vmul.f32 1.442695, %v1223_v63 }
 0x39b   : > { %v1194_v2 = vpop.xlane.xlu1 %1193  ;;  %v3406_v3 = vmax.f32 %v3395_v62, %v1188_v1  ;;  %v3481_v38 = vpop.eup %2876 }
 0x39c   : > { %v3409_v4 = vmax.f32 %v3401_v0, %v1194_v2  ;;  %v1245_v60 = vmul.f32 1.442695, %v1224_v49  ;;  %v1249_v1 = vmul.f32 1.442695, %v1226_v57 }
 0x39d   : > { %1813 = vst.msk [vmem:[#allocation3 + $0x40] sm:$0xff] %vm1475_vm3, %v3406_v3  ;;  %1289 = vperm.xlu1 %2867, %v3374_v52  }
 0x39e   : > { %1816 = vst.msk [vmem:[#allocation3 + $0x58] sm:$0xff] %vm1475_vm3, %v3409_v4  ;;  %v1192_v8 = vpop.xlane.xlu0 %1191  ;;  %2882 = vpow2.f32 %v1245_v60  ;;  %v1230_v35 = vsub.f32 %v3401_v0, %v3409_v4  ;;  %v3489_v2 = vpop.eup %2878 }
 0x39f   : > { %v1190_v10 = vpop.xlane.xlu1 %1189  ;;  %v3424_v11 = vmax.f32 %v3411_v5, %v1192_v8 }
 0x3a0   : > { %v3427_v12 = vmax.f32 %v3417_v7, %v1190_v10  ;;  %v1257_v48 = vmul.f32 1.442695, %v1230_v35 }
 0x3a1   : > { %1815 = vst.msk [vmem:[#allocation3 + $0x50] sm:$0xff] %vm1475_vm3, %v3424_v11  ;;  %1294 = vperm.xlu1 %2867, %v3393_v61   ;;  %v1239_v61 = vmul.f32 1.442695, %v1221_v47 }
 0x3a2   : > { %1814 = vst.msk [vmem:[#allocation3 + $0x48] sm:$0xff] %vm1475_vm3, %v3427_v12  ;;  %1314 = vperm.xlu0 %2866, %v3427_v12   ;;  %v1196_v25 = vpop.xlane.xlu0 %1195  ;;  %v1228_v52 = vsub.f32 %v3417_v7, %v3427_v12  ;;  %v1227_v7 = vsub.f32 %v3395_v62, %v3406_v3 }
 0x3a3   : > { %v1202_v36 = vpop.xlane.xlu1 %1201  ;;  %v3443_v37 = vmax.f32 %v3429_v13, %v1196_v25  ;;  %2884 = vpow2.f32 %v1239_v61  ;;  %v3495_v6 = vpop.eup %2880 }
 0x3a4   : > { %v3446_v39 = vmax.f32 %v3435_v15, %v1202_v36  ;;  %2886 = vpow2.f32 %v1249_v1  ;;  %v1251_v12 = vmul.f32 1.442695, %v1227_v7 }
 0x3a5   : > { %1817 = vst.msk [vmem:[#allocation3 + $0x60] sm:$0xff] %vm1475_vm3, %v3443_v37  ;;  %1304 = vperm.xlu1 %2867, %v3377_v54   ;;  %v1225_v54 = vsub.f32 %v3380_v55, %v3390_v59  ;;  %2888 = vpow2.f32 %v1243_v50  ;;  %v1253_v55 = vmul.f32 1.442695, %v1228_v52  ;;  %v1231_v14 = vsub.f32 %v3429_v13, %v3443_v37 }
 0x3a6   : > { %v1234_v41 = vsub.f32 %v3435_v15, %v3446_v39  ;;  %1820 = vst.msk [vmem:[#allocation3 + $0x78] sm:$0xff] %vm1475_vm3, %v3446_v39  ;;  %1324 = vperm.xlu0 %2866, %v3409_v4   ;;  %v1200_v45 = vpop.xlane.xlu0 %1199  ;;  %v1229_v4 = vsub.f32 %v3411_v5, %v3424_v11  ;;  %2890 = vpow2.f32 %v1257_v48 }
 0x3a7   : > { %v1198_v51 = vpop.xlane.xlu1 %1197  ;;  %v3463_v53 = vmax.f32 %v3448_v40, %v1200_v45  ;;  %v1247_v0 = vmul.f32 1.442695, %v1225_v54  ;;  %v1259_v25 = vmul.f32 1.442695, %v1231_v14 }
 0x3a8   : > { %v1216_v56 = vmax.f32 %v1168_v43, %v1198_v51  ;;  %v3497_v8 = vpop.eup %2882  ;;  %v1255_v9 = vmul.f32 1.442695, %v1229_v4 }
 0x3a9   : > { %v1233_v42 = vsub.f32 %v3448_v40, %v3463_v53  ;;  %1819 = vst.msk [vmem:[#allocation3 + $0x70] sm:$0xff] %vm1475_vm3, %v3463_v53  ;;  %1309 = vperm.xlu1 %2867, %v3406_v3   ;;  %2892 = vpow2.f32 %v1247_v0 }
 0x3aa   : > { %1818 = vst.msk [vmem:[#allocation3 + $0x68] sm:$0xff] %vm1475_vm3, %v1216_v56  ;;  %1334 = vperm.xlu0 %2866, %v1216_v56   ;;  %v1232_v59 = vsub.f32 %v1168_v43, %v1216_v56  ;;  %2894 = vpow2.f32 %v1253_v55 }
 0x3ab   : > { %2896 = vpow2.f32 %v1255_v9 }
 0x3ac   : > { %v1261_v5 = vmul.f32 1.442695, %v1232_v59 }
 0x3ad   : > { %1319 = vperm.xlu1 %2867, %v3424_v11   ;;  %v3503_v10 = vpop.eup %2884 }
 0x3ae   : > { %1344 = vperm.xlu0 %2866, %v3446_v39   ;;  %v3505_v11 = vpop.eup %2886  ;;  %2898 = vpow2.f32 %v1261_v5 }
 0x3af   : > { %v3511_v62 = vpop.eup %2888  ;;  %2900 = vpow2.f32 %v1251_v12 }
 0x3b0   : > { %v3513_v3 = vpop.eup %2890  ;;  %2902 = vpow2.f32 %v1259_v25 }
 0x3b1   : > { %1329 = vperm.xlu1 %2867, %v3443_v37  }
 0x3b2   : > { %1510 = vperm.xlu0 %2866, %v3481_v38  }
 0x3b3   : > { %v3517_v33 = vpop.eup %2892 }
 0x3b4   : > { %v3519_v34 = vpop.eup %2894 }
 0x3b5   : > { %1339 = vperm.xlu1 %2867, %v3463_v53   ;;  %v3523_v13 = vpop.eup %2896 }
 0x3b6   : > { %1525 = vperm.xlu0 %2866, %v3489_v2  }
 0x3b8   : > { %v3525_v36 = vpop.eup %2898 }
 0x3b9   : > { %1515 = vperm.xlu1 %2867, %v3495_v6   ;;  %v3529_v37 = vpop.eup %2900 }
 0x3ba   : > { %1535 = vperm.xlu0 %2866, %v3497_v8   ;;  %v3532_v43 = vpop.eup %2902 }
 0x3bd   : > { %1520 = vperm.xlu1 %2867, %v3503_v10  }
 0x3be   : > { %1545 = vperm.xlu0 %2866, %v3505_v11  }
 0x3c1   : > { %1530 = vperm.xlu1 %2867, %v3511_v62  }
 0x3c2   : > { %1565 = vperm.xlu0 %2866, %v3513_v3  }
 0x3c5   : > { %1540 = vperm.xlu1 %2867, %v3517_v33  }
 0x3c6   : > { %1555 = vperm.xlu0 %2866, %v3519_v34  }
 0x3c9   : > { %1560 = vperm.xlu1 %2867, %v3523_v13  }
 0x3ca   : > { %1575 = vperm.xlu0 %2866, %v3525_v36  }
 0x3cd   : > { %1550 = vperm.xlu1 %2867, %v3529_v37  }
 0x3d1   : > { %1570 = vperm.xlu1 %2867, %v3532_v43  }
 0x40b   : > { %v1280_v44 = vpop.permute.xlu1 %1279 }
 0x40c   : > { %v1349_v45 = vsub.f32 %v3286_v16, %v1280_v44  ;;  %v1270_v46 = vpop.permute.xlu0 %1269 }
 0x40d   : > { %v1347_v49 = vsub.f32 %v3289_v17, %v1270_v46 }
 0x40e   : > { %v1367_v51 = vmul.f32 1.442695, %v1349_v45 }
 0x40f   : > { %v1363_v56 = vmul.f32 1.442695, %v1347_v49  ;;  %v1285_v47 = vpop.permute.xlu1 %1284 }
 0x410   : > { %2904 = vpow2.f32 %v1367_v51  ;;  %v1350_v58 = vsub.f32 %v3292_v18, %v1285_v47 }
 0x411   : > { %2906 = vpow2.f32 %v1363_v56 }
 0x412   : > { %v1369_v57 = vmul.f32 1.442695, %v1350_v58 }
 0x413   : > { %v1275_v60 = vpop.permute.xlu1 %1274 }
 0x414   : > { %2908 = vpow2.f32 %v1369_v57  ;;  %v1348_v61 = vsub.f32 %v3294_v19, %v1275_v60 }
 0x416   : > { %v1365_v63 = vmul.f32 1.442695, %v1348_v61 }
 0x418   : > { %2910 = vpow2.f32 %v1365_v63  ;;  %v1300_v1 = vpop.permute.xlu1 %1299 }
 0x419   : > { %v1353_v16 = vsub.f32 %v3298_v20, %v1300_v1 }
 0x41a   : > { %v2905_v35 = vpop.eup %2904 }
 0x41b   : > { %v2907_v50 = vpop.eup %2906  ;;  %v1375_v17 = vmul.f32 1.442695, %v1353_v16  ;;  %1431 = vadd.xlane.f32.xlu0 %v2905_v35 }
 0x41c   : > { %1427 = vadd.xlane.f32.xlu1 %v2907_v50  ;;  %v1290_v54 = vpop.permute.xlu1 %1289 }
 0x41d   : > { %2912 = vpow2.f32 %v1375_v17  ;;  %v1351_v18 = vsub.f32 %v3300_v21, %v1290_v54 }
 0x41e   : > { %v2909_v48 = vpop.eup %2908 }
 0x41f   : > { %v1371_v52 = vmul.f32 1.442695, %v1351_v18  ;;  %v1605_v0 = vpack.c.bf16 %v2909_v48, %v2905_v35 }
 0x420   : > { %1433 = vadd.xlane.f32.xlu1 %v2909_v48  ;;  %v1295_v4 = vpop.permute.xlu1 %1294 }
 0x421   : > { %2914 = vpow2.f32 %v1371_v52  ;;  %v1352_v19 = vsub.f32 %v3306_v23, %v1295_v4  ;;  %v1315_v55 = vpop.permute.xlu0 %1314 }
 0x422   : > { %v2911_v59 = vpop.eup %2910  ;;  %v1356_v9 = vsub.f32 %v3318_v28, %v1315_v55 }
 0x423   : > { %v1373_v20 = vmul.f32 1.442695, %v1352_v19  ;;  %1429 = vadd.xlane.f32.xlu0 %v2911_v59  ;;  %v1604_v7 = vpack.c.bf16 %v2911_v59, %v2907_v50 }
 0x424   : > { %v1305_v5 = vpop.permute.xlu1 %1304  ;;  %v1381_v44 = vmul.f32 1.442695, %v1356_v9  ;;  %v1263_v9 = vmul.f32 1.442695, %v1233_v42 }
 0x425   : > { %2916 = vpow2.f32 %v1373_v20  ;;  %v1354_v12 = vsub.f32 %v3303_v22, %v1305_v5  ;;  %v1325_v21 = vpop.permute.xlu0 %1324  ;;  %2666 = vmatprep.mubr.bf16.mxu0 %v1604_v7  ;;  %v1265_v5 = vmul.f32 1.442695, %v1234_v41 }
 0x426   : > { %2667 = vmatmul.mubr.bf16.vlgmr.msra.gmra.mrb[16].mxu0 %v1605_v0  ;;  %v1358_v45 = vsub.f32 %v3314_v27, %v1325_v21 }
 0x427   : > { %v2913_v14 = vpop.eup %2912  ;;  %v1377_v25 = vmul.f32 1.442695, %v1354_v12 }
 0x428   : > { %1439 = vadd.xlane.f32.xlu0 %v2913_v14  ;;  %v1310_v23 = vpop.permute.xlu1 %1309  ;;  %v1385_v56 = vmul.f32 1.442695, %v1358_v45 }
 0x429   : > { %2918 = vpow2.f32 %v1377_v25  ;;  %v1355_v46 = vsub.f32 %v3312_v26, %v1310_v23  ;;  %v1335_v49 = vpop.permute.xlu0 %1334 }
 0x42a   : > { %2920 = vpow2.f32 %v1381_v44  ;;  %v1360_v22 = vsub.f32 %v3330_v32, %v1335_v49 }
 0x42b   : > { %v2915_v51 = vpop.eup %2914  ;;  %v1379_v28 = vmul.f32 1.442695, %v1355_v46 }
 0x42c   : > { %1435 = vadd.xlane.f32.xlu0 %v2915_v51  ;;  %v1320_v47 = vpop.permute.xlu1 %1319  ;;  %v1389_v61 = vmul.f32 1.442695, %v1360_v22 }
 0x42d   : > { %2922 = vpow2.f32 %v1379_v28  ;;  %v1357_v58 = vsub.f32 %v3310_v24, %v1320_v47  ;;  %v1345_v57 = vpop.permute.xlu0 %1344 }
 0x42e   : > { %2924 = vpow2.f32 %v1385_v56  ;;  %v1362_v63 = vsub.f32 %v3326_v31, %v1345_v57  ;;  %v1395_v56 = vld [vmem:[#allocation4] sm:$0xff] }
 0x42f   : > { %v2917_v60 = vpop.eup %2916  ;;  %v1383_v27 = vmul.f32 1.442695, %v1357_v58  ;;  %v1411_v58 = vmul.f32 %v3481_v38, %v1395_v56  ;;  %v1401_v38 = vld [vmem:[#allocation4 + $0x30] sm:$0xff] }
 0x430   : > { %v1330_v26 = vpop.permute.xlu1 %1329  ;;  %v1606_v1 = vpack.c.bf16 %v2917_v60, %v2915_v51  ;;  %v1393_v50 = vmul.f32 1.442695, %v1362_v63  ;;  %v1397_v51 = vld [vmem:[#allocation4 + $0x10] sm:$0xff] }
 0x431   : > { %2926 = vpow2.f32 %v1383_v27  ;;  %v1359_v16 = vsub.f32 %v3324_v30, %v1330_v26  ;;  %v1413_v22 = vmul.f32 %v3503_v10, %v1397_v51  ;;  %v1398_v27 = vld [vmem:[#allocation4 + $0x18] sm:$0xff]  ;;  %v1396_v26 = vld [vmem:[#allocation4 + $0x8] sm:$0xff] }
 0x432   : > { %2670 = vmatprep.mubr.bf16.mxu0 %v1606_v1  ;;  %2928 = vpow2.f32 %v1389_v61  ;;  %v1414_v63 = vmul.f32 %v3489_v2, %v1398_v27 }
 0x433   : > { %v2919_v35 = vpop.eup %2918  ;;  %v1387_v32 = vmul.f32 1.442695, %v1359_v16 }
 0x434   : > { %1441 = vadd.xlane.f32.xlu1 %v2919_v35  ;;  %v1340_v17 = vpop.permute.xlu1 %1339  ;;  %v1607_v24 = vpack.c.bf16 %v2919_v35, %v2913_v14  ;;  %v2921_v18 = vpop.eup %2920  ;;  %v1412_v35 = vmul.f32 %v3495_v6, %v1396_v26  ;;  %v1402_v6 = vld [vmem:[#allocation4 + $0x38] sm:$0xff]  ;;  %v1407_v26 = vld [vmem:[#allocation4 + $0x60] sm:$0xff] }
 0x435   : > { %2930 = vpow2.f32 %v1387_v32  ;;  %v1361_v54 = vsub.f32 %v3322_v29, %v1340_v17  ;;  %v3563_v14 = vpop.permute.xlu0 %1510 }
 0x436   : > { %2671 = vmatmul.mubr.bf16.gmra.mrb[20].mxu0 %v1607_v24  ;;  %2932 = vpow2.f32 %v1393_v50  ;;  %v1417_v50 = vmul.f32 %v3517_v33, %v1401_v38  ;;  %v1399_v24 = vld [vmem:[#allocation4 + $0x20] sm:$0xff] }
 0x437   : > { %v2923_v48 = vpop.eup %2922  ;;  %v1391_v31 = vmul.f32 1.442695, %v1361_v54  ;;  %v1415_v2 = vmul.f32 %v3511_v62, %v1399_v24  ;;  %v1493_v24 = vld [vmem:[#allocation5 + $0x8] sm:$0xff] }
 0x438   : > { %1437 = vadd.xlane.f32.xlu1 %v2917_v60  ;;  %v1608_v52 = vpack.c.bf16 %v2921_v18, %v2923_v48  ;;  %v2925_v30 = vpop.eup %2924  ;;  %v3565_v25 = vpop.permute.xlu1 %1515 }
 0x439   : > { %2934 = vpow2.f32 %v1391_v31  ;;  %v3567_v40 = vpop.permute.xlu0 %1525  ;;  %v1418_v31 = vmul.f32 %v3505_v11, %v1402_v6  ;;  %v1403_v11 = vld [vmem:[#allocation4 + $0x40] sm:$0xff]  ;;  %v1589_v6 = vmul.f32 %v3565_v25, %v1493_v24 }
 0x43a   : > { %2674 = vmatprep.mubr.bf16.mxu0 %v1608_v52  ;;  %2936 = vpow2.f32 %v1263_v9  ;;  %v1404_v9 = vld [vmem:[#allocation4 + $0x48] sm:$0xff] }
 0x43b   : > { %v2927_v0 = vpop.eup %2926  ;;  %2938 = vpow2.f32 %v1265_v5  ;;  %v1420_v56 = vmul.f32 %v3519_v34, %v1404_v9 }
 0x43c   : > { %1449 = vadd.xlane.f32.xlu1 %v2925_v30  ;;  %1447 = vadd.xlane.f32.xlu0 %v2927_v0  ;;  %v1609_v4 = vpack.c.bf16 %v2925_v30, %v2927_v0  ;;  %v2929_v19 = vpop.eup %2928  ;;  %v3569_v53 = vpop.permute.xlu1 %1520  ;;  %v1400_v30 = vld [vmem:[#allocation4 + $0x28] sm:$0xff] }
 0x43d   : > { %v3571_v42 = vpop.permute.xlu0 %1535  ;;  %v1416_v33 = vmul.f32 %v3497_v8, %v1400_v30  ;;  %v1419_v8 = vmul.f32 %v3529_v37, %v1403_v11  ;;  %v1408_v37 = vld [vmem:[#allocation4 + $0x68] sm:$0xff] }
 0x43e   : > { %2675 = vmatmul.mubr.bf16.gmra.mrb[24].mxu0 %v1609_v4 }
 0x43f   : > { %v2931_v55 = vpop.eup %2930 }
 0x440   : > { %1445 = vadd.xlane.f32.xlu1 %v2921_v18  ;;  %1443 = vadd.xlane.f32.xlu0 %v2923_v48  ;;  %v1610_v29 = vpack.c.bf16 %v2929_v19, %v2931_v55  ;;  %v2933_v59 = vpop.eup %2932  ;;  %v3573_v15 = vpop.permute.xlu1 %1530 }
 0x441   : > { %v3575_v39 = vpop.permute.xlu0 %1545 }
 0x442   : > { %2678 = vmatprep.mubr.bf16.mxu0 %v1610_v29 }
 0x443   : > { %v2935_v20 = vpop.eup %2934 }
 0x444   : > { %1457 = vadd.xlane.f32.xlu1 %v2933_v59  ;;  %1455 = vadd.xlane.f32.xlu0 %v2935_v20  ;;  %v1611_v7 = vpack.c.bf16 %v2933_v59, %v2935_v20  ;;  %v3557_v12 = vpop.eup %2936  ;;  %v3577_v41 = vpop.permute.xlu1 %1540 }
 0x445   : > { %v3560_v21 = vpop.eup %2938  ;;  %v3579_v44 = vpop.permute.xlu0 %1565 }
 0x446   : > { %2679 = vmatmul.mubr.bf16.gmra.mrb[28].mxu0 %v1611_v7 }
 0x448   : > { %1453 = vadd.xlane.f32.xlu1 %v2929_v19  ;;  %1451 = vadd.xlane.f32.xlu0 %v2931_v55  ;;  %v3581_v45 = vpop.permute.xlu1 %1560  ;;  %v1405_v19 = vld [vmem:[#allocation4 + $0x50] sm:$0xff]  ;;  %v1406_v55 = vld [vmem:[#allocation4 + $0x58] sm:$0xff] }
 0x449   : > { %v3583_v23 = vpop.permute.xlu0 %1555  ;;  %v1421_v62 = vmul.f32 %v3523_v13, %v1405_v19  ;;  %v1422_v59 = vmul.f32 %v3513_v3, %v1406_v55  ;;  %v1410_v13 = vld [vmem:[#allocation4 + $0x78] sm:$0xff] }
 0x44a   : > { %v1426_v27 = vmul.f32 %v3560_v21, %v1410_v13  ;;  %v1499_v19 = vld [vmem:[#allocation5 + $0x38] sm:$0xff] }
 0x44b   : > { %v1595_v25 = vmul.f32 %v3575_v39, %v1499_v19 }
 0x44c   : > { %v3585_v46 = vpop.permute.xlu1 %1550 }
 0x44d   : > { %v3587_v49 = vpop.permute.xlu0 %1575 }
 0x450   : > { %v3589_v28 = vpop.permute.xlu1 %1570 }
 0x459   : > { %1580 = vperm.xlu1 %2867, %v3557_v12  }
 0x45e   : > { %1585 = vperm.xlu0 %2866, %v3560_v21   ;;  %v1494_v21 = vld [vmem:[#allocation5 + $0x10] sm:$0xff] }
 0x4a8   : > { %v1432_v47 = vpop.xlane.xlu0 %1431 }
 0x4a9   : > { %v1461_v57 = vadd.f32 %v1432_v47, %v1413_v22  ;;  %v1428_v60 = vpop.xlane.xlu1 %1427 }
 0x4aa   : > { %v1459_v61 = vadd.f32 %v1428_v60, %v1411_v58  ;;  %v1409_v58 = vld [vmem:[#allocation4 + $0x70] sm:$0xff] }
 0x4ab   : > { %1478 = vst.msk [vmem:[#allocation4 + $0x10] sm:$0xff] %vm1475_vm3, %v1461_v57  ;;  %v1425_v60 = vmul.f32 %v3557_v12, %v1409_v58 }
 0x4ac   : > { %1476 = vst.msk [vmem:[#allocation4] sm:$0xff] %vm1475_vm3, %v1459_v61 }
 0x4ad   : > { %v1434_v1 = vpop.xlane.xlu1 %1433 }
 0x4ae   : > { %v1462_v16 = vadd.f32 %v1434_v1, %v1414_v63 }
 0x4b0   : > { %1479 = vst.msk [vmem:[#allocation4 + $0x18] sm:$0xff] %vm1475_vm3, %v1462_v16  ;;  %v1430_v10 = vpop.xlane.xlu0 %1429  ;;  %v1423_v16 = vmul.f32 %v3532_v43, %v1407_v26 }
 0x4b1   : > { %v1460_v32 = vadd.f32 %v1430_v10, %v1412_v35  ;;  %v1424_v35 = vmul.f32 %v3525_v36, %v1408_v37 }
 0x4b3   : > { %1477 = vst.msk [vmem:[#allocation4 + $0x8] sm:$0xff] %vm1475_vm3, %v1460_v32 }
 0x4b5   : > { %v1440_v17 = vpop.xlane.xlu0 %1439 }
 0x4b6   : > { %v1465_v54 = vadd.f32 %v1440_v17, %v1417_v50  ;;  %v1492_v50 = vld [vmem:[#allocation5] sm:$0xff]  ;;  %v1495_v17 = vld [vmem:[#allocation5 + $0x18] sm:$0xff] }
 0x4b7   : > { %v1591_v43 = vmul.f32 %v3567_v40, %v1495_v17  ;;  %v1844_v19 = vld [vmem:[#allocation4 + $0x18] sm:$0xff] (!%p2446_p10) }
 0x4b8   : > { %1482 = vst.msk [vmem:[#allocation4 + $0x30] sm:$0xff] %vm1475_vm3, %v1465_v54  ;;  %v1590_v54 = vmul.f32 %v3569_v53, %v1494_v21  ;;  %v1496_v53 = vld [vmem:[#allocation5 + $0x20] sm:$0xff] }
 0x4b9   : > { %v1436_v18 = vpop.xlane.xlu0 %1435  ;;  %v1592_v40 = vmul.f32 %v3573_v15, %v1496_v53  ;;  %v1501_v15 = vld [vmem:[#allocation5 + $0x48] sm:$0xff] }
 0x4ba   : > { %v1463_v48 = vadd.f32 %v1436_v18, %v1415_v2  ;;  %v1588_v2 = vmul.f32 %v3563_v14, %v1492_v50  ;;  %v1497_v14 = vld [vmem:[#allocation5 + $0x28] sm:$0xff] }
 0x4bc   : > { %1480 = vst.msk [vmem:[#allocation4 + $0x20] sm:$0xff] %vm1475_vm3, %v1463_v48 }
 0x4c1   : > { %v1442_v52 = vpop.xlane.xlu1 %1441 }
 0x4c2   : > { %v1466_v0 = vadd.f32 %v1442_v52, %v1418_v31 }
 0x4c4   : > { %1483 = vst.msk [vmem:[#allocation4 + $0x38] sm:$0xff] %vm1475_vm3, %v1466_v0 }
 0x4c5   : > { %v1438_v4 = vpop.xlane.xlu1 %1437 }
 0x4c6   : > { %v1464_v29 = vadd.f32 %v1438_v4, %v1416_v33  ;;  %v1498_v4 = vld [vmem:[#allocation5 + $0x30] sm:$0xff] }
 0x4c7   : > { %v1594_v55 = vmul.f32 %v3577_v41, %v1498_v4  ;;  %v1503_v41 = vld [vmem:[#allocation5 + $0x58] sm:$0xff]  ;;  %v1974_v4 = vld [vmem:[%s3812_s8 + $0x28] sm:$0xff] (!%p2446_p10) }
 0x4c8   : > { %1481 = vst.msk [vmem:[#allocation4 + $0x28] sm:$0xff] %vm1475_vm3, %v1464_v29 }
 0x4c9   : > { %v1448_v20 = vpop.xlane.xlu0 %1447  ;;  %v1450_v7 = vpop.xlane.xlu1 %1449 }
 0x4ca   : > { %v1469_v5 = vadd.f32 %v1448_v20, %v1421_v62  ;;  %v1470_v51 = vadd.f32 %v1450_v7, %v1422_v59  ;;  %v1593_v20 = vmul.f32 %v3571_v42, %v1497_v14  ;;  %v1599_v42 = vmul.f32 %v3579_v44, %v1503_v41 }
 0x4cc   : > { %1486 = vst.msk [vmem:[#allocation4 + $0x50] sm:$0xff] %vm1475_vm3, %v1469_v5  ;;  %1487 = vst.msk [vmem:[#allocation4 + $0x58] sm:$0xff] %vm1475_vm3, %v1470_v51  ;;  %v1502_v51 = vld [vmem:[#allocation5 + $0x50] sm:$0xff] }
 0x4cd   : > { %v1444_v22 = vpop.xlane.xlu0 %1443  ;;  %v1446_v47 = vpop.xlane.xlu1 %1445 }
 0x4ce   : > { %v1467_v57 = vadd.f32 %v1444_v22, %v1419_v8  ;;  %v1468_v3 = vadd.f32 %v1446_v47, %v1420_v56  ;;  %v1500_v56 = vld [vmem:[#allocation5 + $0x40] sm:$0xff]  ;;  %v1598_v22 = vmul.f32 %v3581_v45, %v1502_v51  ;;  %v1507_v45 = vld [vmem:[#allocation5 + $0x78] sm:$0xff] }
 0x4cf   : > { %v1596_v39 = vmul.f32 %v3585_v46, %v1500_v56  ;;  %v1846_v56 = vld [vmem:[#allocation4 + $0x28] sm:$0xff] (!%p2446_p10) }
 0x4d0   : > { %1484 = vst.msk [vmem:[#allocation4 + $0x40] sm:$0xff] %vm1475_vm3, %v1467_v57  ;;  %1485 = vst.msk [vmem:[#allocation4 + $0x48] sm:$0xff] %vm1475_vm3, %v1468_v3  ;;  %v1597_v57 = vmul.f32 %v3583_v23, %v1501_v15 }
 0x4d1   : > { %v1456_v61 = vpop.xlane.xlu0 %1455  ;;  %v1458_v63 = vpop.xlane.xlu1 %1457 }
 0x4d2   : > { %v1473_v1 = vadd.f32 %v1456_v61, %v1425_v60  ;;  %v1474_v34 = vadd.f32 %v1458_v63, %v1426_v27  ;;  %v1506_v63 = vld [vmem:[#allocation5 + $0x70] sm:$0xff] }
 0x4d3   : > { %v1852_v53 = vld [vmem:[#allocation4 + $0x58] sm:$0xff] (!%p2446_p10) }
 0x4d4   : > { %1490 = vst.msk [vmem:[#allocation4 + $0x70] sm:$0xff] %vm1475_vm3, %v1473_v1  ;;  %1491 = vst.msk [vmem:[#allocation4 + $0x78] sm:$0xff] %vm1475_vm3, %v1474_v34  ;;  %v1504_v1 = vld [vmem:[#allocation5 + $0x60] sm:$0xff]  ;;  %v1505_v34 = vld [vmem:[#allocation5 + $0x68] sm:$0xff] }
 0x4d5   : > { %v1452_v10 = vpop.xlane.xlu0 %1451  ;;  %v1454_v32 = vpop.xlane.xlu1 %1453 }
 0x4d6   : > { %v1471_v38 = vadd.f32 %v1452_v10, %v1423_v16  ;;  %v1472_v12 = vadd.f32 %v1454_v32, %v1424_v35  ;;  %v1600_v16 = vmul.f32 %v3589_v28, %v1504_v1  ;;  %v1841_v28 = vld [vmem:[#allocation4] sm:$0xff] (!%p2446_p10)  ;;  %v1983_v1 = vld [vmem:[%s3812_s8 + $0x70] sm:$0xff] (!%p2446_p10) }
 0x4d8   : > { %1488 = vst.msk [vmem:[#allocation4 + $0x60] sm:$0xff] %vm1475_vm3, %v1471_v38  ;;  %1489 = vst.msk [vmem:[#allocation4 + $0x68] sm:$0xff] %vm1475_vm3, %v1472_v12  ;;  %v1601_v38 = vmul.f32 %v3587_v49, %v1505_v34  ;;  %v1849_v49 = vld [vmem:[#allocation4 + $0x40] sm:$0xff] (!%p2446_p10) }
 0x4d9   : > { %v1581_v26 = vpop.permute.xlu1 %1580 }
 0x4da   : > { %v1602_v44 = vmul.f32 %v1581_v26, %v1506_v63  ;;  %v1848_v63 = vld [vmem:[#allocation4 + $0x38] sm:$0xff] (!%p2446_p10) }
 0x4dd   : > { %v1586_v46 = vpop.permute.xlu0 %1585 }
 0x4de   : > { %v1603_v23 = vmul.f32 %v1586_v46, %v1507_v45  ;;  %v1984_v45 = vld [vmem:[%s3812_s8 + $0x78] sm:$0xff] (!%p2446_p10) }
 0x4df   : > { %v1854_v51 = vld [vmem:[#allocation4 + $0x68] sm:$0xff] (!%p2446_p10) }
 0x4f9   : > { %v2668_v18 = vpop.f32.mrb[16].mxu0 }
 0x4fa   : > { %v1775_v36 = vadd.f32 %v2668_v18, %v1590_v54  ;;  %v1710_v48 = vpop.f32.mrb[17].mxu0  ;;  %v1842_v54 = vld [vmem:[#allocation4 + $0x8] sm:$0xff] (!%p2446_p10)  ;;  %v3033_v18 = vmov (!%p2446_p10), 0  }
 0x4fb   : > { %v1773_v31 = vadd.f32 %v1710_v48, %v1588_v2  ;;  %v2669_v52 = vpop.f32.mrb[18].mxu0  ;;  %v1850_v2 = vld [vmem:[#allocation4 + $0x48] sm:$0xff] (!%p2446_p10)  ;;  %2941 = vset.pattern.permute.xlu1 (!%p2446_p10), %v3033_v18  ;;  %2940 = vset.pattern.permute.xlu0 (!%p2446_p10), %v3033_v18  ;;  %2942 = vrcp.f32 (!%p2446_p10), %v1842_v54  ;;  %v1969_v48 = vld [vmem:[%s3812_s8] sm:$0xff] (!%p2446_p10) }
 0x4fc   : > { %1791 = vst [vmem:[#allocation5 + $0x10] sm:$0xff] %v1775_v36  ;;  %v1776_v30 = vadd.f32 %v2669_v52, %v1591_v43  ;;  %v1713_v0 = vpop.f32.mrb[19].mxu0  ;;  %2944 = vrcp.f32 (!%p2446_p10), %v1841_v28  ;;  %v1851_v43 = vld [vmem:[#allocation4 + $0x50] sm:$0xff] (!%p2446_p10) }
 0x4fd   : > { %1789 = vst [vmem:[#allocation5] sm:$0xff] %v1773_v31  ;;  %v1774_v33 = vadd.f32 %v1713_v0, %v1589_v6  ;;  %2946 = vrcp.f32 (!%p2446_p10), %v1850_v2  ;;  %v1843_v36 = vld [vmem:[#allocation4 + $0x10] sm:$0xff] (!%p2446_p10)  ;;  %v1970_v6 = vld [vmem:[%s3812_s8 + $0x8] sm:$0xff] (!%p2446_p10) }
 0x4fe   : > { %1792 = vst [vmem:[#allocation5 + $0x18] sm:$0xff] %v1776_v30  ;;  %2948 = vrcp.f32 (!%p2446_p10), %v1849_v49  ;;  %v2754_v31 = vpack.c.bf16 (!%p2446_p10), %v1970_v6, %v1969_v48  ;;  %v1971_v52 = vld [vmem:[%s3812_s8 + $0x10] sm:$0xff] (!%p2446_p10)  ;;  %v1972_v30 = vld [vmem:[%s3812_s8 + $0x18] sm:$0xff] (!%p2446_p10) }
 0x4ff   : > { %1790 = vst [vmem:[#allocation5 + $0x8] sm:$0xff] %v1774_v33  ;;  %2950 = vrcp.f32 (!%p2446_p10), %v1851_v43  ;;  %v2758_v0 = vpack.c.bf16 (!%p2446_p10), %v1972_v30, %v1971_v52  ;;  %v1973_v33 = vld [vmem:[%s3812_s8 + $0x20] sm:$0xff] (!%p2446_p10) }
 0x500   : > { %2952 = vrcp.f32 (!%p2446_p10), %v1843_v36  ;;  %2755 = vmatprep.subr.bf16.mxu0 (!%p2446_p10), %v2754_v31  ;;  %2790 = vmatprep.subr.bf16.mxu1 (!%p2446_p10), %v2754_v31  ;;  %v2762_v14 = vpack.c.bf16 (!%p2446_p10), %v1974_v4, %v1973_v33 }
 0x501   : > { %2757 = vmatpush3.bf16.msra.mxu0 (!%p2446_p10), %v2754_v31  ;;  %2798 = vmatpush3.bf16.msra.mxu1 (!%p2446_p10), %v2754_v31  ;;  %2954 = vrcp.f32 (!%p2446_p10), %v1852_v53 }
 0x502   : > { %2759 = vmatprep.subr.bf16.mxu0 (!%p2446_p10), %v2758_v0  ;;  %2791 = vmatprep.subr.bf16.mxu1 (!%p2446_p10), %v2758_v0  ;;  %2956 = vrcp.f32 (!%p2446_p10), %v1844_v19 }
 0x503   : > { %v1827_v36 = vld [vmem:[#allocation5 + $0x10] sm:$0xff] (!%p2446_p10) }
 0x505   : > { %2761 = vmatpush3.bf16.msra.mxu0 (!%p2446_p10), %v2758_v0  ;;  %2799 = vmatpush3.bf16.msra.mxu1 (!%p2446_p10), %v2758_v0  ;;  %v1828_v0 = vld [vmem:[#allocation5 + $0x18] sm:$0xff] (!%p2446_p10) }
 0x506   : > { %2763 = vmatprep.subr.bf16.mxu0 (!%p2446_p10), %v2762_v14  ;;  %2792 = vmatprep.subr.bf16.mxu1 (!%p2446_p10), %v2762_v14 }
 0x509   : > { %v2672_v29 = vpop.f32.mrb[20].mxu0  ;;  %2765 = vmatpush3.bf16.msra.mxu0 (!%p2446_p10), %v2762_v14  ;;  %2800 = vmatpush3.bf16.msra.mxu1 (!%p2446_p10), %v2762_v14 }
 0x50a   : > { %v1779_v62 = vadd.f32 %v2672_v29, %v1594_v55  ;;  %v1726_v59 = vpop.f32.mrb[21].mxu0  ;;  %v2943_v55 = vpop.eup (!%p2446_p10), %2942  ;;  %v1976_v29 = vld [vmem:[%s3812_s8 + $0x38] sm:$0xff] (!%p2446_p10) }
 0x50b   : > { %v1777_v7 = vadd.f32 %v1726_v59, %v1592_v40  ;;  %v2673_v11 = vpop.f32.mrb[22].mxu0  ;;  %v1975_v40 = vld [vmem:[%s3812_s8 + $0x30] sm:$0xff] (!%p2446_p10)  ;;  %1880 = vperm.xlu1 (!%p2446_p10), %2941, %v2943_v55  }
 0x50c   : > { %1795 = vst [vmem:[#allocation5 + $0x30] sm:$0xff] %v1779_v62  ;;  %v1780_v9 = vadd.f32 %v2673_v11, %v1595_v25  ;;  %v1729_v5 = vpop.f32.mrb[23].mxu0  ;;  %v2945_v25 = vpop.eup (!%p2446_p10), %2944  ;;  %v1853_v62 = vld [vmem:[#allocation4 + $0x60] sm:$0xff] (!%p2446_p10)  ;;  %v2766_v11 = vpack.c.bf16 (!%p2446_p10), %v1976_v29, %v1975_v40 }
 0x50d   : > { %1793 = vst [vmem:[#allocation5 + $0x20] sm:$0xff] %v1777_v7  ;;  %v1778_v8 = vadd.f32 %v1729_v5, %v1593_v20  ;;  %v2947_v59 = vpop.eup (!%p2446_p10), %2946  ;;  %1875 = vperm.xlu0 (!%p2446_p10), %2940, %v2945_v25   ;;  %v1845_v20 = vld [vmem:[#allocation4 + $0x20] sm:$0xff] (!%p2446_p10)  ;;  %2958 = vrcp.f32 (!%p2446_p10), %v1853_v62  ;;  %v1978_v5 = vld [vmem:[%s3812_s8 + $0x48] sm:$0xff] (!%p2446_p10) }
 0x50e   : > { %1796 = vst [vmem:[#allocation5 + $0x38] sm:$0xff] %v1780_v9  ;;  %v2949_v7 = vpop.eup (!%p2446_p10), %2948  ;;  %v1977_v9 = vld [vmem:[%s3812_s8 + $0x40] sm:$0xff] (!%p2446_p10)  ;;  %2960 = vrcp.f32 (!%p2446_p10), %v1845_v20  ;;  %2767 = vmatprep.subr.bf16.mxu0 (!%p2446_p10), %v2766_v11  ;;  %2793 = vmatprep.subr.bf16.mxu1 (!%p2446_p10), %v2766_v11 }
 0x50f   : > { %1794 = vst [vmem:[#allocation5 + $0x28] sm:$0xff] %v1778_v8  ;;  %1920 = vperm.xlu1 (!%p2446_p10), %2941, %v2947_v59   ;;  %v2951_v8 = vpop.eup (!%p2446_p10), %2950  ;;  %v2770_v15 = vpack.c.bf16 (!%p2446_p10), %v1978_v5, %v1977_v9  ;;  %2962 = vrcp.f32 (!%p2446_p10), %v1854_v51  ;;  %2769 = vmatpush3.bf16.msra.mxu0 (!%p2446_p10), %v2766_v11 }
 0x510   : > { %v2953_v41 = vpop.eup (!%p2446_p10), %2952  ;;  %2964 = vrcp.f32 (!%p2446_p10), %v1846_v56  ;;  %2801 = vmatpush3.bf16.msra.mxu1 (!%p2446_p10), %v2766_v11 }
 0x511   : > { %v2676_v47 = vpop.f32.mrb[24].mxu0  ;;  %1915 = vperm.xlu0 (!%p2446_p10), %2940, %v2949_v7   ;;  %2771 = vmatprep.subr.bf16.mxu0 (!%p2446_p10), %v2770_v15 }
 0x512   : > { %v1783_v58 = vadd.f32 %v2676_v47, %v1598_v22  ;;  %v1742_v13 = vpop.f32.mrb[25].mxu0  ;;  %v1979_v22 = vld [vmem:[%s3812_s8 + $0x50] sm:$0xff] (!%p2446_p10)  ;;  %2794 = vmatprep.subr.bf16.mxu1 (!%p2446_p10), %v2770_v15 }
 0x513   : > { %v1781_v3 = vadd.f32 %v1742_v13, %v1596_v39  ;;  %v2677_v60 = vpop.f32.mrb[26].mxu0  ;;  %v1980_v39 = vld [vmem:[%s3812_s8 + $0x58] sm:$0xff] (!%p2446_p10)  ;;  %1925 = vperm.xlu1 (!%p2446_p10), %2941, %v2951_v8   ;;  %v1855_v47 = vld [vmem:[#allocation4 + $0x70] sm:$0xff] (!%p2446_p10)  ;;  %2773 = vmatpush3.bf16.msra.mxu0 (!%p2446_p10), %v2770_v15 }
 0x514   : > { %1799 = vst [vmem:[#allocation5 + $0x50] sm:$0xff] %v1783_v58  ;;  %v1784_v27 = vadd.f32 %v2677_v60, %v1599_v42  ;;  %v1745_v61 = vpop.f32.mrb[27].mxu0  ;;  %v2955_v42 = vpop.eup (!%p2446_p10), %2954  ;;  %v1847_v58 = vld [vmem:[#allocation4 + $0x30] sm:$0xff] (!%p2446_p10)  ;;  %2966 = vrcp.f32 (!%p2446_p10), %v1855_v47  ;;  %v1982_v60 = vld [vmem:[%s3812_s8 + $0x68] sm:$0xff] (!%p2446_p10)  ;;  %2802 = vmatpush3.bf16.msra.mxu1 (!%p2446_p10), %v2770_v15  ;;  %v1829_v55 = vld [vmem:[#allocation5 + $0x20] sm:$0xff] (!%p2446_p10) }
 0x515   : > { %1797 = vst [vmem:[#allocation5 + $0x40] sm:$0xff] %v1781_v3  ;;  %v1782_v37 = vadd.f32 %v1745_v61, %v1597_v57  ;;  %1885 = vperm.xlu0 (!%p2446_p10), %2940, %v2953_v41   ;;  %v2957_v13 = vpop.eup (!%p2446_p10), %2956  ;;  %v2774_v57 = vpack.c.bf16 (!%p2446_p10), %v1980_v39, %v1979_v22  ;;  %v1981_v3 = vld [vmem:[%s3812_s8 + $0x60] sm:$0xff] (!%p2446_p10)  ;;  %2968 = vrcp.f32 (!%p2446_p10), %v1847_v58  ;;  %v1831_v8 = vld [vmem:[#allocation5 + $0x30] sm:$0xff] (!%p2446_p10)  ;;  %v1832_v47 = vld [vmem:[#allocation5 + $0x38] sm:$0xff] (!%p2446_p10) }
 0x516   : > { %1800 = vst [vmem:[#allocation5 + $0x58] sm:$0xff] %v1784_v27  ;;  %v1856_v27 = vld [vmem:[#allocation4 + $0x78] sm:$0xff] (!%p2446_p10)  ;;  %v1830_v20 = vld [vmem:[#allocation5 + $0x28] sm:$0xff] (!%p2446_p10) }
 0x517   : > { %1798 = vst [vmem:[#allocation5 + $0x48] sm:$0xff] %v1782_v37  ;;  %1930 = vperm.xlu1 (!%p2446_p10), %2941, %v2955_v42   ;;  %v2959_v61 = vpop.eup (!%p2446_p10), %2958  ;;  %2775 = vmatprep.subr.bf16.mxu0 (!%p2446_p10), %v2774_v57  ;;  %v2778_v37 = vpack.c.bf16 (!%p2446_p10), %v1982_v60, %v1981_v3  ;;  %2970 = vrcp.f32 (!%p2446_p10), %v1856_v27  ;;  %v1986_v3 = vld [vmem:[%s3142_s22 + $0x8] sm:$0xff] (!%p2446_p10)  ;;  %v1985_v60 = vld [vmem:[%s3142_s22] sm:$0xff] (!%p2446_p10) }
 0x518   : > { %v2961_v26 = vpop.eup (!%p2446_p10), %2960  ;;  %2795 = vmatprep.subr.bf16.mxu1 (!%p2446_p10), %v2774_v57  ;;  %2972 = vrcp.f32 (!%p2446_p10), %v1848_v63  ;;  %2777 = vmatpush3.bf16.msra.mxu0 (!%p2446_p10), %v2774_v57 }
 0x519   : > { %v2680_v35 = vpop.f32.mrb[28].mxu0  ;;  %1824 = sbr.rel (%p2446_p10) target bundleno = 1673 (0x689), region = 68  ;;  %1890 = vperm.xlu0 (!%p2446_p10), %2940, %v2957_v13   ;;  %v2963_v46 = vpop.eup (!%p2446_p10), %2962  ;;  %2779 = vmatprep.subr.bf16.mxu0 (!%p2446_p10), %v2778_v37 }
 0x51a   : > { %v1787_v10 = vadd.f32 %v2680_v35, %v1602_v44  ;;  %v1758_v32 = vpop.f32.mrb[29].mxu0  ;;  %v2965_v34 = vpop.eup (!%p2446_p10), %2964  ;;  %2803 = vmatpush3.bf16.msra.mxu1 (!%p2446_p10), %v2774_v57  ;;  %v2782_v44 = vpack.c.bf16 (!%p2446_p10), %v1984_v45, %v1983_v1  ;;  %v1994_v1 = vld [vmem:[%s3142_s22 + $0x48] sm:$0xff] (!%p2446_p10) }
 0x51b   : > { %v1785_v12 = vadd.f32 %v1758_v32, %v1600_v16  ;;  %v2681_v21 = vpop.f32.mrb[30].mxu0  ;;  %1935 = vperm.xlu1 (!%p2446_p10), %2941, %v2959_v61   ;;  %2796 = vmatprep.subr.bf16.mxu1 (!%p2446_p10), %v2778_v37  ;;  %v1826_v32 = vld [vmem:[#allocation5 + $0x8] sm:$0xff] (!%p2446_p10)  ;;  %v1835_v43 = vld [vmem:[#allocation5 + $0x50] sm:$0xff] (!%p2446_p10)  ;;  %v3691_v61 = vld [vmem:[%s3813_s9] ss:$0 sm:$0xff] (!%p2446_p10) }
 0x51c   : > { %1803 = vst [vmem:[#allocation5 + $0x70] sm:$0xff] %v1787_v10  ;;  %v1788_v50 = vadd.f32 %v2681_v21, %v1603_v23  ;;  %v1761_v17 = vpop.f32.mrb[31].mxu0  ;;  %2781 = vmatpush3.bf16.msra.mxu0 (!%p2446_p10), %v2778_v37  ;;  %v1833_v54 = vld [vmem:[#allocation5 + $0x40] sm:$0xff] (!%p2446_p10) }
 0x51d   : > { %1801 = vst [vmem:[#allocation5 + $0x60] sm:$0xff] %v1785_v12  ;;  %v1786_v24 = vadd.f32 %v1761_v17, %v1601_v38  ;;  %1895 = vperm.xlu0 (!%p2446_p10), %2940, %v2961_v26   ;;  %2783 = vmatprep.subr.bf16.mxu0 (!%p2446_p10), %v2782_v44  ;;  %v1825_v38 = vld [vmem:[#allocation5] sm:$0xff] (!%p2446_p10)  ;;  %v1836_v30 = vld [vmem:[#allocation5 + $0x58] sm:$0xff] (!%p2446_p10) }
 0x51e   : > { %1804 = vst [vmem:[#allocation5 + $0x78] sm:$0xff] %v1788_v50  ;;  %v2967_v16 = vpop.eup (!%p2446_p10), %2966  ;;  %2804 = vmatpush3.bf16.msra.mxu1 (!%p2446_p10), %v2778_v37 }
 0x51f   : > { %1802 = vst [vmem:[#allocation5 + $0x68] sm:$0xff] %v1786_v24  ;;  %1940 = vperm.xlu1 (!%p2446_p10), %2941, %v2963_v46   ;;  %v2969_v35 = vpop.eup (!%p2446_p10), %2968  ;;  %2797 = vmatprep.subr.bf16.mxu1 (!%p2446_p10), %v2782_v44  ;;  %v1834_v24 = vld [vmem:[#allocation5 + $0x48] sm:$0xff] (!%p2446_p10) }
 0x520   : > { %2785 = vmatpush3.bf16.msra.mxu0 %v2782_v44  ;;  %v2186_v46 = vld [vmem:[%s3137_s30 + $0x8] sm:$0xff] }
 0x521   : > { %1900 = vperm.xlu0 %2940, %v2965_v34   ;;  %v2971_v23 = vpop.eup %2970  ;;  %v2185_v34 = vld [vmem:[%s3137_s30] sm:$0xff] }
 0x522   : > { %v2973_v10 = vpop.eup %2972  ;;  %2805 = vmatpush3.bf16.msra.mxu1 %v2782_v44  ;;  %v1993_v44 = vld [vmem:[%s3142_s22 + $0x40] sm:$0xff] }
 0x523   : > { %1945 = vperm.xlu1 %2941, %v2967_v16   ;;  %v1839_v51 = vld [vmem:[#allocation5 + $0x70] sm:$0xff] }
 0x524   : > { %v1837_v14 = vld [vmem:[#allocation5 + $0x60] sm:$0xff] }
 0x525   : > { %1905 = vperm.xlu0 %2940, %v2969_v35   ;;  %v1840_v39 = vld [vmem:[#allocation5 + $0x78] sm:$0xff] }
 0x526   : > { %v1838_v59 = vld [vmem:[#allocation5 + $0x68] sm:$0xff] }
 0x527   : > { %1950 = vperm.xlu1 %2941, %v2971_v23   ;;  %v1988_v23 = vld [vmem:[%s3142_s22 + $0x18] sm:$0xff] }
 0x529   : > { %1910 = vperm.xlu0 %2940, %v2973_v10   ;;  %v1996_v10 = vld [vmem:[%s3142_s22 + $0x58] sm:$0xff] }
 0x58a   : > { %v1881_v12 = vpop.permute.xlu1 %1880 }
 0x58b   : > { %v1954_v21 = vmul.f32 %v1881_v12, %v1826_v32  ;;  %v1987_v32 = vld [vmem:[%s3142_s22 + $0x10] sm:$0xff]  ;;  %v1990_v12 = vld [vmem:[%s3142_s22 + $0x28] sm:$0xff] }
 0x58c   : > { %v1876_v50 = vpop.permute.xlu0 %1875 }
 0x58d   : > { %v1953_v17 = vmul.f32 %v1876_v50, %v1825_v38  ;;  %v1995_v38 = vld [vmem:[%s3142_s22 + $0x50] sm:$0xff] }
 0x58e   : > { %v1921_v28 = vpop.permute.xlu1 %1920 }
 0x58f   : > { %2714 = vmatprep.mubr.f32.mxu0 %v1953_v17  ;;  %v1962_v2 = vmul.f32 %v1921_v28, %v1834_v24  ;;  %v1997_v28 = vld [vmem:[%s3142_s22 + $0x60] sm:$0xff] }
 0x590   : > { %v1916_v18 = vpop.permute.xlu0 %1915  ;;  %2715 = vmatmul.mubr.f32.vlgmr.msra.gmra.mrb[0].mxu0 %v1954_v21  ;;  %v1998_v21 = vld [vmem:[%s3142_s22 + $0x68] sm:$0xff] }
 0x591   : > { %v1961_v49 = vmul.f32 %v1916_v18, %v1833_v54  ;;  %v1989_v54 = vld [vmem:[%s3142_s22 + $0x20] sm:$0xff] }
 0x592   : > { %v1926_v48 = vpop.permute.xlu1 %1925 }
 0x593   : > { %2726 = vmatprep.mubr.f32.mxu1 %v1961_v49  ;;  %v1963_v6 = vmul.f32 %v1926_v48, %v1835_v43  ;;  %v3711_v43 = vld [vmem:[%s3142_s22 + $0x78] sm:$0xff]  ;;  %v3717_v48 = vld [vmem:[%s3142_s22 + $0x70] sm:$0xff] }
 0x594   : > { %v1886_v31 = vpop.permute.xlu0 %1885  ;;  %2727 = vmatmul.mubr.f32.vlgmr.msra.gmra.mrb[0].mxu1 %v1962_v2  ;;  %v3708_v2 = vld [vmem:[%s3142_s22 + $0x38] sm:$0xff] }
 0x595   : > { %v1955_v52 = vmul.f32 %v1886_v31, %v1827_v36  ;;  %2729 = vmatprep.mubr.f32.mxu1 %v1963_v6  ;;  %v3714_v36 = vld [vmem:[%s3142_s22 + $0x30] sm:$0xff] }
 0x596   : > { %v1931_v33 = vpop.permute.xlu1 %1930 }
 0x597   : > { %2717 = vmatprep.mubr.f32.mxu0 %v1955_v52  ;;  %v1964_v4 = vmul.f32 %v1931_v33, %v1836_v30  ;;  %v2194_v30 = vld [vmem:[%s3137_s30 + $0x48] sm:$0xff] }
 0x598   : > { %v1891_v53 = vpop.permute.xlu0 %1890 }
 0x599   : > { %v1956_v19 = vmul.f32 %v1891_v53, %v1828_v0  ;;  %2730 = vmatmul.mubr.f32.gmra.mrb[2].mxu1 %v1964_v4  ;;  %v2193_v4 = vld [vmem:[%s3137_s30 + $0x40] sm:$0xff] }
 0x59a   : > { %v1936_v40 = vpop.permute.xlu1 %1935 }
 0x59b   : > { %2718 = vmatmul.mubr.f32.gmra.mrb[2].mxu0 %v1956_v19  ;;  %v1965_v29 = vmul.f32 %v1936_v40, %v1837_v14 }
 0x59c   : > { %v1896_v25 = vpop.permute.xlu0 %1895 }
 0x59d   : > { %v1957_v62 = vmul.f32 %v1896_v25, %v1829_v55  ;;  %2732 = vmatprep.mubr.f32.mxu1 %v1965_v29 }
 0x59e   : > { %v1941_v7 = vpop.permute.xlu1 %1940 }
 0x59f   : > { %2720 = vmatprep.mubr.f32.mxu0 %v1957_v62  ;;  %v1966_v11 = vmul.f32 %v1941_v7, %v1838_v59 }
 0x5a0   : > { %v1901_v9 = vpop.permute.xlu0 %1900 }
 0x5a1   : > { %v1958_v5 = vmul.f32 %v1901_v9, %v1830_v20  ;;  %2733 = vmatmul.mubr.f32.gmra.mrb[4].mxu1 %v1966_v11 }
 0x5a2   : > { %v1946_v56 = vpop.permute.xlu1 %1945 }
 0x5a3   : > { %2721 = vmatmul.mubr.f32.gmra.mrb[4].mxu0 %v1958_v5  ;;  %v1967_v41 = vmul.f32 %v1946_v56, %v1839_v51  ;;  %v2196_v5 = vld [vmem:[%s3137_s30 + $0x58] sm:$0xff] }
 0x5a4   : > { %v1906_v15 = vpop.permute.xlu0 %1905 }
 0x5a5   : > { %v1959_v22 = vmul.f32 %v1906_v15, %v1831_v8  ;;  %2735 = vmatprep.mubr.f32.mxu1 %v1967_v41  ;;  %v2188_v8 = vld [vmem:[%s3137_s30 + $0x18] sm:$0xff]  ;;  %v2195_v15 = vld [vmem:[%s3137_s30 + $0x50] sm:$0xff] }
 0x5a6   : > { %v1951_v42 = vpop.permute.xlu1 %1950 }
 0x5a7   : > { %2723 = vmatprep.mubr.f32.mxu0 %v1959_v22  ;;  %v1968_v58 = vmul.f32 %v1951_v42, %v1840_v39  ;;  %v2187_v39 = vld [vmem:[%s3137_s30 + $0x10] sm:$0xff] }
 0x5a8   : > { %v1911_v13 = vpop.permute.xlu0 %1910 }
 0x5a9   : > { %v1960_v57 = vmul.f32 %v1911_v13, %v1832_v47  ;;  %2736 = vmatmul.mubr.f32.gmra.mrb[6].mxu1 %v1968_v58 }
 0x5ab   : > { %2724 = vmatmul.mubr.f32.gmra.mrb[6].mxu0 %v1960_v57 }
 0x663   : > { %v2716_v27 = vpop.f32.mrb[0].mxu0 }
 0x664   : > { %v2073_v63 = vadd.f32 %v2716_v27, %v1986_v3  ;;  %v2067_v26 = vpop.f32.mrb[1].mxu0 }
 0x665   : > { %v2068_v37 = vadd.f32 %v2067_v26, %v1985_v60 }
 0x666   : > { %v2154_v45 = vadd.f32 %v3691_v61, %v2073_v63 }
 0x667   : > { %v2153_v16 = vadd.f32 %v3691_v61, %v2068_v37  ;;  %v2728_v35 = vpop.f32.mrb[0].mxu1 }
 0x668   : > { %v2170_v50 = vmax.f32 %v2154_v45, 0.0  ;;  %v2113_v17 = vadd.f32 %v2728_v35, %v1994_v1  ;;  %v2107_v24 = vpop.f32.mrb[1].mxu1 }
 0x669   : > { %v2169_v18 = vmax.f32 %v2153_v16, 0.0  ;;  %v2108_v49 = vadd.f32 %v2107_v24, %v1993_v44  ;;  %v2198_v16 = vld [vmem:[%s3137_s30 + $0x68] sm:$0xff] }
 0x66a   : > { %v2202_v6 = vadd.f32 %v2186_v46, %v2170_v50  ;;  %v2162_v31 = vadd.f32 %v3691_v61, %v2113_v17 }
 0x66b   : > { %v2201_v52 = vadd.f32 %v2185_v34, %v2169_v18  ;;  %v2161_v0 = vadd.f32 %v3691_v61, %v2108_v49 }
 0x66c   : > { %v2178_v33 = vmax.f32 %v2162_v31, 0.0  ;;  %2218 = vst.msk [vmem:[%s3147_s20 + $0x8] sm:$0xff] %vm832_vm2, %v2202_v6  ;;  %v2731_v19 = vpop.f32.mrb[2].mxu1 }
 0x66d   : > { %v2177_v53 = vmax.f32 %v2161_v0, 0.0  ;;  %2217 = vst.msk [vmem:[%s3147_s20] sm:$0xff] %vm832_vm2, %v2201_v52  ;;  %v2123_v40 = vadd.f32 %v2731_v19, %v1996_v10  ;;  %v2117_v29 = vpop.f32.mrb[3].mxu1  ;;  %v2200_v19 = vld [vmem:[%s3137_s30 + $0x78] sm:$0xff] }
 0x66e   : > { %v2210_v14 = vadd.f32 %v2194_v30, %v2178_v33  ;;  %v2719_v55 = vpop.f32.mrb[2].mxu0  ;;  %v2118_v20 = vadd.f32 %v2117_v29, %v1995_v38  ;;  %v2197_v38 = vld [vmem:[%s3137_s30 + $0x60] sm:$0xff] }
 0x66f   : > { %v2209_v25 = vadd.f32 %v2193_v4, %v2177_v53  ;;  %v2083_v62 = vadd.f32 %v2719_v55, %v1988_v23  ;;  %v2077_v59 = vpop.f32.mrb[3].mxu0  ;;  %v2164_v7 = vadd.f32 %v3691_v61, %v2123_v40  ;;  %v2190_v23 = vld [vmem:[%s3137_s30 + $0x28] sm:$0xff]  ;;  %v2199_v40 = vld [vmem:[%s3137_s30 + $0x70] sm:$0xff] }
 0x670   : > { %v2078_v11 = vadd.f32 %v2077_v59, %v1987_v32  ;;  %2226 = vst.msk [vmem:[%s3147_s20 + $0x48] sm:$0xff] %vm832_vm2, %v2210_v14  ;;  %v2163_v51 = vadd.f32 %v3691_v61, %v2118_v20 }
 0x671   : > { %v2156_v9 = vadd.f32 %v3691_v61, %v2083_v62  ;;  %2225 = vst.msk [vmem:[%s3147_s20 + $0x40] sm:$0xff] %vm832_vm2, %v2209_v25  ;;  %v2180_v56 = vmax.f32 %v2164_v7, 0.0  ;;  %v2191_v25 = vld [vmem:[%s3137_s30 + $0x30] sm:$0xff] }
 0x672   : > { %v2155_v41 = vadd.f32 %v3691_v61, %v2078_v11  ;;  %v2179_v47 = vmax.f32 %v2163_v51, 0.0 }
 0x673   : > { %v2172_v22 = vmax.f32 %v2156_v9, 0.0  ;;  %v2212_v42 = vadd.f32 %v2196_v5, %v2180_v56 }
 0x674   : > { %v2171_v58 = vmax.f32 %v2155_v41, 0.0  ;;  %v2211_v57 = vadd.f32 %v2195_v15, %v2179_v47  ;;  %v2734_v3 = vpop.f32.mrb[4].mxu1 }
 0x675   : > { %v2204_v13 = vadd.f32 %v2188_v8, %v2172_v22  ;;  %v2133_v63 = vadd.f32 %v2734_v3, %v1998_v21  ;;  %v2127_v26 = vpop.f32.mrb[5].mxu1  ;;  %2228 = vst.msk [vmem:[%s3147_s20 + $0x58] sm:$0xff] %vm832_vm2, %v2212_v42  ;;  %v2189_v21 = vld [vmem:[%s3137_s30 + $0x20] sm:$0xff] }
 0x676   : > { %v2203_v60 = vadd.f32 %v2187_v39, %v2171_v58  ;;  %v2722_v27 = vpop.f32.mrb[4].mxu0  ;;  %v2128_v45 = vadd.f32 %v2127_v26, %v1997_v28  ;;  %2227 = vst.msk [vmem:[%s3147_s20 + $0x50] sm:$0xff] %vm832_vm2, %v2211_v57 }
 0x677   : > { %v2093_v37 = vadd.f32 %v2722_v27, %v1990_v12  ;;  %v2087_v1 = vpop.f32.mrb[5].mxu0  ;;  %2220 = vst.msk [vmem:[%s3147_s20 + $0x18] sm:$0xff] %vm832_vm2, %v2204_v13  ;;  %v2166_v46 = vadd.f32 %v3691_v61, %v2133_v63 }
 0x678   : > { %v2088_v34 = vadd.f32 %v2087_v1, %v1989_v54  ;;  %2219 = vst.msk [vmem:[%s3147_s20 + $0x10] sm:$0xff] %vm832_vm2, %v2203_v60  ;;  %v2165_v35 = vadd.f32 %v3691_v61, %v2128_v45 }
 0x679   : > { %v2158_v44 = vadd.f32 %v3691_v61, %v2093_v37  ;;  %v2182_v10 = vmax.f32 %v2166_v46, 0.0 }
 0x67a   : > { %v2157_v32 = vadd.f32 %v3691_v61, %v2088_v34  ;;  %v2181_v50 = vmax.f32 %v2165_v35, 0.0 }
 0x67b   : > { %v2174_v12 = vmax.f32 %v2158_v44, 0.0  ;;  %v2214_v17 = vadd.f32 %v2198_v16, %v2182_v10 }
 0x67c   : > { %v2173_v24 = vmax.f32 %v2157_v32, 0.0  ;;  %v2213_v28 = vadd.f32 %v2197_v38, %v2181_v50  ;;  %v2737_v18 = vpop.f32.mrb[6].mxu1 }
 0x67d   : > { %v2206_v54 = vadd.f32 %v2190_v23, %v2174_v12  ;;  %v2143_v31 = vadd.f32 %v2737_v18, %v3711_v43  ;;  %v2137_v52 = vpop.f32.mrb[7].mxu1  ;;  %2230 = vst.msk [vmem:[%s3147_s20 + $0x68] sm:$0xff] %vm832_vm2, %v2214_v17 }
 0x67e   : > { %v2205_v49 = vadd.f32 %v2189_v21, %v2173_v24  ;;  %v2725_v6 = vpop.f32.mrb[6].mxu0  ;;  %v2138_v33 = vadd.f32 %v2137_v52, %v3717_v48  ;;  %2229 = vst.msk [vmem:[%s3147_s20 + $0x60] sm:$0xff] %vm832_vm2, %v2213_v28  ;;  %v2192_v48 = vld [vmem:[%s3137_s30 + $0x38] sm:$0xff] }
 0x67f   : > { %v2103_v30 = vadd.f32 %v2725_v6, %v3708_v2  ;;  %v2097_v0 = vpop.f32.mrb[7].mxu0  ;;  %2222 = vst.msk [vmem:[%s3147_s20 + $0x28] sm:$0xff] %vm832_vm2, %v2206_v54  ;;  %v2168_v4 = vadd.f32 %v3691_v61, %v2143_v31 }
 0x680   : > { %v2098_v53 = vadd.f32 %v2097_v0, %v3714_v36  ;;  %2221 = vst.msk [vmem:[%s3147_s20 + $0x20] sm:$0xff] %vm832_vm2, %v2205_v49  ;;  %v2167_v2 = vadd.f32 %v3691_v61, %v2138_v33 }
 0x681   : > { %v2160_v43 = vadd.f32 %v3691_v61, %v2103_v30  ;;  %v2184_v14 = vmax.f32 %v2168_v4, 0.0 }
 0x682   : > { %v2159_v55 = vadd.f32 %v3691_v61, %v2098_v53  ;;  %v2183_v62 = vmax.f32 %v2167_v2, 0.0 }
 0x683   : > { %v2176_v29 = vmax.f32 %v2160_v43, 0.0  ;;  %v2216_v36 = vadd.f32 %v2200_v19, %v2184_v14 }
 0x684   : > { %v2175_v59 = vmax.f32 %v2159_v55, 0.0  ;;  %v2215_v7 = vadd.f32 %v2199_v40, %v2183_v62 }
 0x685   : > { %v2208_v20 = vadd.f32 %v2192_v48, %v2176_v29  ;;  %2232 = vst.msk [vmem:[%s3147_s20 + $0x78] sm:$0xff] %vm832_vm2, %v2216_v36 }
 0x686   : > { %v2207_v11 = vadd.f32 %v2191_v25, %v2175_v59  ;;  %2231 = vst.msk [vmem:[%s3147_s20 + $0x70] sm:$0xff] %vm832_vm2, %v2215_v7 }
 0x687   : > { %2224 = vst.msk [vmem:[%s3147_s20 + $0x38] sm:$0xff] %vm832_vm2, %v2208_v20 }
 0x688   : > { %2223 = vst.msk [vmem:[%s3147_s20 + $0x30] sm:$0xff] %vm832_vm2, %v2207_v11 }
 0x689 PF: > { %s20_s19 = sadd.s32 1, %s3028_s19   ;;  %s3824_s14 = sld [smem:[#allocation6_spill]] }
 0x68a   : > { %p17_p11 = scmp.ge.s32.totalorder %s20_s19, 10   ;;  %s3825_s15 = sld [smem:[#allocation7_spill]] }
 0x68b   : > { %s3826_s22 = sld [smem:[#allocation8_spill]]  ;;  %s3827_s17 = sld [smem:[#allocation9_spill]] }
 0x68c   : > { %s3828_s18 = sld [smem:[#allocation10_spill]]  ;;  %s3829_s13 = smov %s3016_s16 }
 0x68d   :  { %19 = sbr.rel (!%p17_p11) target bundleno = 4 (0x4), region = 107 }
 0x691   : > { %s3830_s16 = smov %s3826_s22 }

</bundles_post_ra>
